<compile_context>
chip_gen: v7x
topology: tpu7x:2x2x1
jax: 0.10.0
libtpu: 0.0.40
codegen_flags: <defaults>
</compile_context>

<pallas_src>
import numpy as np
import jax
import jax.numpy as jnp
from jax.experimental import pallas as pl
from jax.experimental.pallas import tpu as pltpu

LANE = 128


def _round_up(x, m):
    return ((x + m - 1) // m) * m


def se_bottleneck_kernel(x_ref,
                         w1_ref, b1_ref,
                         w2_ref, b2_ref,
                         w3_ref, b3_ref,
                         sw1_ref, sw2_ref,
                         out_ref,
                         pad_ref):
    _, H, W, Cp = x_ref.shape
    Pp = w1_ref.shape[1]
    C4p = w3_ref.shape[1]

    # residual (identity path) kept in f32
    x = x_ref[...].reshape(H * W, Cp)

    # conv1 (1x1, bn1 + bn2 folded into weight/bias) + relu  -> one MXU matmul
    h = jnp.dot(x.astype(jnp.bfloat16), w1_ref[...],
                preferred_element_type=jnp.float32)
    h = jnp.maximum(h + b1_ref[...], 0.0)                     # (HW, Pp) f32

    # conv2 (3x3, stride 1, pad 1) via im2col over a halo-padded scratch.
    # Only the 1-pixel halo is zeroed (interior fully overwritten below);
    # done every step so a megacore-split grid stays correct.
    pad_ref[0:1, :, :] = jnp.zeros((1, W + 2, Pp), jnp.float32)
    pad_ref[H + 1:H + 2, :, :] = jnp.zeros((1, W + 2, Pp), jnp.float32)
    pad_ref[1:H + 1, 0:1, :] = jnp.zeros((H, 1, Pp), jnp.float32)
    pad_ref[1:H + 1, W + 1:W + 2, :] = jnp.zeros((H, 1, Pp), jnp.float32)
    pad_ref[1:H + 1, 1:W + 1, :] = h.reshape(H, W, Pp)

    # 9 shifted windows concatenated on the lane axis -> single K = 9*Pp matmul
    cols = jnp.concatenate(
        [pad_ref[ky:ky + H, kx:kx + W, :]
         for ky in range(3) for kx in range(3)], axis=-1)      # (H, W, 9*Pp)
    h = jnp.dot(cols.reshape(H * W, 9 * Pp).astype(jnp.bfloat16), w2_ref[...],
                preferred_element_type=jnp.float32)
    h = jnp.maximum(h + b2_ref[...], 0.0)                      # bn3 folded, relu

    # conv3 (1x1, bn4 folded)
    u = jnp.dot(h.astype(jnp.bfloat16), w3_ref[...],
                preferred_element_type=jnp.float32) + b3_ref[...]   # (HW, C4p)

    # SE: global avg pool -> fc -> relu -> fc -> sigmoid -> channel scale
    pooled = jnp.mean(u, axis=0, keepdims=True)                # (1, C4p)
    y = jnp.maximum(jnp.dot(pooled.astype(jnp.bfloat16), sw1_ref[...],
                            preferred_element_type=jnp.float32), 0.0)
    y = jax.nn.sigmoid(jnp.dot(y.astype(jnp.bfloat16), sw2_ref[...],
                               preferred_element_type=jnp.float32))
    u = u * y

    # residual add + relu
    out = jnp.maximum(u + x, 0.0)
    out_ref[...] = out.reshape(1, H, W, Cp).astype(out_ref.dtype)


def fold_and_pad_params(p):
    """Fold eval-mode BNs into conv weights/biases, pad channels to LANE,
    cast matmul weights to bf16.  Done once on the host."""
    inplanes, planes = p["w1"].shape
    c4 = p["w3"].shape[1]
    hidden = p["sw1"].shape[1]
    cp, pp = _round_up(inplanes, LANE), _round_up(planes, LANE)
    c4p, hp = _round_up(c4, LANE), _round_up(hidden, LANE)

    s1, b1 = p["s1"][0], p["b1"][0]
    s2, b2 = p["s2"][0], p["b2"][0]
    s3, b3 = p["s3"][0], p["b3"][0]
    s4, b4 = p["s4"][0], p["b4"][0]

    # conv1(bn1(x)) then bn2:  x @ (diag(s1) W1 diag(s2)) + ((b1 @ W1)*s2 + b2)
    w1f = (s1[:, None] * p["w1"]) * s2[None, :]
    b1f = (b1 @ p["w1"]) * s2 + b2
    # (conv2(h) + cb2) then bn3:  conv(h, W2*s3) + (cb2*s3 + b3)
    w2f = p["w2"] * s3[None, None, None, :]
    b2f = p["cb2"][0] * s3 + b3
    # conv3(h) then bn4:  h @ (W3*s4) + b4
    w3f = p["w3"] * s4[None, :]
    b3f = b4

    def pad2(a, r, c):
        return jnp.pad(a, ((0, r - a.shape[0]), (0, c - a.shape[1])))

    w1p = pad2(w1f, cp, pp).astype(jnp.bfloat16)
    w2p = jnp.pad(w2f, ((0, 0), (0, 0),
                        (0, pp - planes), (0, pp - planes)))
    w2p = w2p.reshape(9 * pp, pp).astype(jnp.bfloat16)       # (ky,kx,cin) rows
    w3p = pad2(w3f, pp, c4p).astype(jnp.bfloat16)
    sw1p = pad2(p["sw1"], c4p, hp).astype(jnp.bfloat16)
    sw2p = pad2(p["sw2"], hp, c4p).astype(jnp.bfloat16)
    b1p = jnp.pad(b1f, (0, pp - planes)).reshape(1, pp).astype(jnp.float32)
    b2p = jnp.pad(b2f, (0, pp - planes)).reshape(1, pp).astype(jnp.float32)
    b3p = jnp.pad(b3f, (0, c4p - c4)).reshape(1, c4p).astype(jnp.float32)
    return dict(w1=w1p, b1=b1p, w2=w2p, b2=b2p, w3=w3p, b3=b3p,
                sw1=sw1p, sw2=sw2p, cp=cp, pp=pp, c4p=c4p)


def se_bottleneck(x, params):
    """x: (N, H, W, Cin) NHWC with Cin == planes*4 (identity residual)."""
    N, H, W, Cin = x.shape
    planes = params["w1"].shape[1]
    assert Cin == planes * 4, "identity residual path requires inplanes == planes*4"

    kp = fold_and_pad_params(params)
    cp, pp = kp["cp"], kp["pp"]
    xp = jnp.pad(x, ((0, 0), (0, 0), (0, 0), (0, cp - Cin)))

    def full(a):
        nd = a.ndim
        return pl.BlockSpec(a.shape, lambda n, _nd=nd: (0,) * _nd)

    act_spec = pl.BlockSpec((1, H, W, cp), lambda n: (n, 0, 0, 0))

    out = pl.pallas_call(
        se_bottleneck_kernel,
        out_shape=jax.ShapeDtypeStruct((N, H, W, cp), x.dtype),
        grid=(N,),
        in_specs=[act_spec,
                  full(kp["w1"]), full(kp["b1"]),
                  full(kp["w2"]), full(kp["b2"]),
                  full(kp["w3"]), full(kp["b3"]),
                  full(kp["sw1"]), full(kp["sw2"])],
        out_specs=act_spec,
        scratch_shapes=[pltpu.VMEM((H + 2, W + 2, pp), jnp.float32)],
        compiler_params=pltpu.CompilerParams(
            dimension_semantics=("parallel",),
            vmem_limit_bytes=32 * 1024 * 1024),
    )(xp, kp["w1"], kp["b1"], kp["w2"], kp["b2"],
      kp["w3"], kp["b3"], kp["sw1"], kp["sw2"])
    return out[..., :Cin]


def make_params(key, inplanes, planes, reduction):
    c4 = planes * 4
    hidden = max(c4 // reduction, 1)
    keys = list(jax.random.split(key, 22))
    it = iter(keys)

    def bn(c):
        gamma = 1.0 + 0.1 * jax.random.normal(next(it), (1, c), jnp.float32)
        beta = 0.1 * jax.random.normal(next(it), (1, c), jnp.float32)
        mean = 0.1 * jax.random.normal(next(it), (1, c), jnp.float32)
        var = jax.random.uniform(next(it), (1, c), jnp.float32,
                                 minval=0.5, maxval=1.5)
        scale = gamma / jnp.sqrt(var + 1e-5)
        shift = beta - mean * scale
        return scale, shift

    s1, b1 = bn(inplanes)
    s2, b2 = bn(planes)
    s3, b3 = bn(planes)
    s4, b4 = bn(c4)
    w1 = 0.1 * jax.random.normal(next(it), (inplanes, planes), jnp.float32)
    w2 = 0.1 * jax.random.normal(next(it), (3, 3, planes, planes), jnp.float32)
    cb2 = 0.1 * jax.random.normal(next(it), (1, planes), jnp.float32)
    w3 = 0.1 * jax.random.normal(next(it), (planes, c4), jnp.float32)
    sw1 = 0.1 * jax.random.normal(next(it), (c4, hidden), jnp.float32)
    sw2 = 0.1 * jax.random.normal(next(it), (hidden, c4), jnp.float32)
    return dict(s1=s1, b1=b1, w1=w1, s2=s2, b2=b2, w2=w2, cb2=cb2,
                s3=s3, b3=b3, w3=w3, s4=s4, b4=b4, sw1=sw1, sw2=sw2)


def reference(x, p):
    """Pure-JAX f32 reference of the same eval-mode forward pass (NHWC)."""
    h = x * p["s1"] + p["b1"]
    h = jnp.einsum("nhwc,co->nhwo", h, p["w1"])
    h = jnp.maximum(h * p["s2"] + p["b2"], 0.0)
    h = jax.lax.conv_general_dilated(
        h, p["w2"], window_strides=(1, 1), padding="SAME",
        dimension_numbers=("NHWC", "HWIO", "NHWC"))
    h = h + p["cb2"]
    h = jnp.maximum(h * p["s3"] + p["b3"], 0.0)
    h = jnp.einsum("nhwc,co->nhwo", h, p["w3"])
    u = h * p["s4"] + p["b4"]
    pooled = jnp.mean(u, axis=(1, 2))
    y = jnp.maximum(pooled @ p["sw1"], 0.0)
    y = jax.nn.sigmoid(y @ p["sw2"])
    u = u * y[:, None, None, :]
    return jnp.maximum(u + x, 0.0)


if __name__ == "__main__":
    # planes=8 -> expansion*planes = 32 = inplanes, so the identity residual
    # path (downsample=None, stride=1) is shape-valid.
    inplanes, planes, reduction = 32, 8, 16
    N, H, W = 2, 8, 8

    key = jax.random.PRNGKey(0)
    kx, kp = jax.random.split(key)
    x = jax.random.normal(kx, (N, H, W, inplanes), jnp.float32)
    params = make_params(kp, inplanes, planes, reduction)

    out = se_bottleneck(x, params)
    out = jax.block_until_ready(out)

    ref = reference(x, params)
    assert out.shape == (N, H, W, inplanes)
    np.testing.assert_allclose(np.asarray(out), np.asarray(ref),
                               rtol=2e-2, atol=2e-2)
    print("KERNEL_OK")
</pallas_src>

<mosaic_0001>
module attributes {stable_mosaic.version = 11 : i64} {
  func.func @se_bottleneck_kernel(%arg0: i32, %arg1: memref<1x8x8x128xf32, #tpu.memory_space<vmem>>, %arg2: memref<128x128xbf16, #tpu.memory_space<vmem>>, %arg3: memref<1x128xf32, #tpu.memory_space<vmem>>, %arg4: memref<1152x128xbf16, #tpu.memory_space<vmem>>, %arg5: memref<1x128xf32, #tpu.memory_space<vmem>>, %arg6: memref<128x128xbf16, #tpu.memory_space<vmem>>, %arg7: memref<1x128xf32, #tpu.memory_space<vmem>>, %arg8: memref<128x128xbf16, #tpu.memory_space<vmem>>, %arg9: memref<128x128xbf16, #tpu.memory_space<vmem>>, %arg10: memref<1x8x8x128xf32, #tpu.memory_space<vmem>>, %arg11: memref<10x10x128xf32, #tpu.memory_space<vmem>>) attributes {dimension_semantics = [#tpu.dimension_semantics<parallel>], iteration_bounds = array<i64: 2>, scalar_prefetch = 0 : i64, scratch_operands = 1 : i64, tpu.core_type = #tpu.core_type<tc>, window_params = [{transform_indices = @transform_0, window_bounds = array<i64: 1, 8, 8, 128>}, {pipeline_mode = #tpu.pipeline_mode<synchronous>, transform_indices = @transform_1, window_bounds = array<i64: 128, 128>}, {pipeline_mode = #tpu.pipeline_mode<synchronous>, transform_indices = @transform_2, window_bounds = array<i64: 1, 128>}, {pipeline_mode = #tpu.pipeline_mode<synchronous>, transform_indices = @transform_3, window_bounds = array<i64: 1152, 128>}, {pipeline_mode = #tpu.pipeline_mode<synchronous>, transform_indices = @transform_4, window_bounds = array<i64: 1, 128>}, {pipeline_mode = #tpu.pipeline_mode<synchronous>, transform_indices = @transform_5, window_bounds = array<i64: 128, 128>}, {pipeline_mode = #tpu.pipeline_mode<synchronous>, transform_indices = @transform_6, window_bounds = array<i64: 1, 128>}, {pipeline_mode = #tpu.pipeline_mode<synchronous>, transform_indices = @transform_7, window_bounds = array<i64: 128, 128>}, {pipeline_mode = #tpu.pipeline_mode<synchronous>, transform_indices = @transform_8, window_bounds = array<i64: 128, 128>}, {transform_indices = @transform_9, window_bounds = array<i64: 1, 8, 8, 128>}]} {
    %c0 = arith.constant 0 : index
    %c0_0 = arith.constant 0 : index
    %c0_1 = arith.constant 0 : index
    %c0_2 = arith.constant 0 : index
    %0 = vector.load %arg1[%c0, %c0_0, %c0_1, %c0_2] : memref<1x8x8x128xf32, #tpu.memory_space<vmem>>, vector<1x8x8x128xf32>
    %1 = vector.shape_cast %0 : vector<1x8x8x128xf32> to vector<64x128xf32>
    %2 = arith.truncf %1 : vector<64x128xf32> to vector<64x128xbf16>
    %c0_3 = arith.constant 0 : index
    %c0_4 = arith.constant 0 : index
    %3 = vector.load %arg2[%c0_3, %c0_4] : memref<128x128xbf16, #tpu.memory_space<vmem>>, vector<128x128xbf16>
    %cst = arith.constant dense<0.000000e+00> : vector<64x128xf32>
    %4 = tpu.matmul %2, %3, %cst {dimension_numbers = #tpu.dot_dimension_numbers<[1], [0], [0], [1], [0, 0, 1, 1], [], []>} : vector<64x128xbf16>, vector<128x128xbf16>, vector<64x128xf32> -> vector<64x128xf32>
    %c0_5 = arith.constant 0 : index
    %c0_6 = arith.constant 0 : index
    %5 = vector.load %arg3[%c0_5, %c0_6] : memref<1x128xf32, #tpu.memory_space<vmem>>, vector<1x128xf32>
    %6 = vector.broadcast %5 : vector<1x128xf32> to vector<64x128xf32>
    %7 = arith.addf %4, %6 : vector<64x128xf32>
    %cst_7 = arith.constant 0.000000e+00 : f32
    %8 = vector.broadcast %cst_7 : f32 to vector<64x128xf32>
    %9 = arith.maximumf %7, %8 : vector<64x128xf32>
    %cst_8 = arith.constant 0.000000e+00 : f32
    %10 = vector.broadcast %cst_8 : f32 to vector<1x10x128xf32>
    %c0_9 = arith.constant 0 : index
    %c0_10 = arith.constant 0 : index
    %c0_11 = arith.constant 0 : index
    %11 = vector.load %arg11[%c0_9, %c0_10, %c0_11] : memref<10x10x128xf32, #tpu.memory_space<vmem>>, vector<1x10x128xf32>
    tpu.vector_store %arg11[%c0_9, %c0_10, %c0_11], %10 {strides = array<i32>} : memref<10x10x128xf32, #tpu.memory_space<vmem>>, vector<1x10x128xf32>,
    %cst_12 = arith.constant 0.000000e+00 : f32
    %12 = vector.broadcast %cst_12 : f32 to vector<1x10x128xf32>
    %c9 = arith.constant 9 : index
    %c0_13 = arith.constant 0 : index
    %c0_14 = arith.constant 0 : index
    %13 = vector.load %arg11[%c9, %c0_13, %c0_14] : memref<10x10x128xf32, #tpu.memory_space<vmem>>, vector<1x10x128xf32>
    tpu.vector_store %arg11[%c9, %c0_13, %c0_14], %12 {strides = array<i32>} : memref<10x10x128xf32, #tpu.memory_space<vmem>>, vector<1x10x128xf32>,
    %cst_15 = arith.constant 0.000000e+00 : f32
    %14 = vector.broadcast %cst_15 : f32 to vector<8x1x128xf32>
    %c1 = arith.constant 1 : index
    %c0_16 = arith.constant 0 : index
    %c0_17 = arith.constant 0 : index
    %15 = vector.load %arg11[%c1, %c0_16, %c0_17] : memref<10x10x128xf32, #tpu.memory_space<vmem>>, vector<8x1x128xf32>
    tpu.vector_store %arg11[%c1, %c0_16, %c0_17], %14 {strides = array<i32>} : memref<10x10x128xf32, #tpu.memory_space<vmem>>, vector<8x1x128xf32>,
    %cst_18 = arith.constant 0.000000e+00 : f32
    %16 = vector.broadcast %cst_18 : f32 to vector<8x1x128xf32>
    %c1_19 = arith.constant 1 : index
    %c9_20 = arith.constant 9 : index
    %c0_21 = arith.constant 0 : index
    %17 = vector.load %arg11[%c1_19, %c9_20, %c0_21] : memref<10x10x128xf32, #tpu.memory_space<vmem>>, vector<8x1x128xf32>
    tpu.vector_store %arg11[%c1_19, %c9_20, %c0_21], %16 {strides = array<i32>} : memref<10x10x128xf32, #tpu.memory_space<vmem>>, vector<8x1x128xf32>,
    %18 = vector.shape_cast %9 : vector<64x128xf32> to vector<8x8x128xf32>
    %c1_22 = arith.constant 1 : index
    %c1_23 = arith.constant 1 : index
    %c0_24 = arith.constant 0 : index
    %19 = vector.load %arg11[%c1_22, %c1_23, %c0_24] : memref<10x10x128xf32, #tpu.memory_space<vmem>>, vector<8x8x128xf32>
    tpu.vector_store %arg11[%c1_22, %c1_23, %c0_24], %18 {strides = array<i32>} : memref<10x10x128xf32, #tpu.memory_space<vmem>>, vector<8x8x128xf32>,
    %c0_25 = arith.constant 0 : index
    %c0_26 = arith.constant 0 : index
    %c0_27 = arith.constant 0 : index
    %20 = vector.load %arg11[%c0_25, %c0_26, %c0_27] : memref<10x10x128xf32, #tpu.memory_space<vmem>>, vector<8x8x128xf32>
    %c0_28 = arith.constant 0 : index
    %c1_29 = arith.constant 1 : index
    %c0_30 = arith.constant 0 : index
    %21 = vector.load %arg11[%c0_28, %c1_29, %c0_30] : memref<10x10x128xf32, #tpu.memory_space<vmem>>, vector<8x8x128xf32>
    %c0_31 = arith.constant 0 : index
    %c2 = arith.constant 2 : index
    %c0_32 = arith.constant 0 : index
    %22 = vector.load %arg11[%c0_31, %c2, %c0_32] : memref<10x10x128xf32, #tpu.memory_space<vmem>>, vector<8x8x128xf32>
    %c1_33 = arith.constant 1 : index
    %c0_34 = arith.constant 0 : index
    %c0_35 = arith.constant 0 : index
    %23 = vector.load %arg11[%c1_33, %c0_34, %c0_35] : memref<10x10x128xf32, #tpu.memory_space<vmem>>, vector<8x8x128xf32>
    %c1_36 = arith.constant 1 : index
    %c1_37 = arith.constant 1 : index
    %c0_38 = arith.constant 0 : index
    %24 = vector.load %arg11[%c1_36, %c1_37, %c0_38] : memref<10x10x128xf32, #tpu.memory_space<vmem>>, vector<8x8x128xf32>
    %c1_39 = arith.constant 1 : index
    %c2_40 = arith.constant 2 : index
    %c0_41 = arith.constant 0 : index
    %25 = vector.load %arg11[%c1_39, %c2_40, %c0_41] : memref<10x10x128xf32, #tpu.memory_space<vmem>>, vector<8x8x128xf32>
    %c2_42 = arith.constant 2 : index
    %c0_43 = arith.constant 0 : index
    %c0_44 = arith.constant 0 : index
    %26 = vector.load %arg11[%c2_42, %c0_43, %c0_44] : memref<10x10x128xf32, #tpu.memory_space<vmem>>, vector<8x8x128xf32>
    %c2_45 = arith.constant 2 : index
    %c1_46 = arith.constant 1 : index
    %c0_47 = arith.constant 0 : index
    %27 = vector.load %arg11[%c2_45, %c1_46, %c0_47] : memref<10x10x128xf32, #tpu.memory_space<vmem>>, vector<8x8x128xf32>
    %c2_48 = arith.constant 2 : index
    %c2_49 = arith.constant 2 : index
    %c0_50 = arith.constant 0 : index
    %28 = vector.load %arg11[%c2_48, %c2_49, %c0_50] : memref<10x10x128xf32, #tpu.memory_space<vmem>>, vector<8x8x128xf32>
    %29 = tpu.concatenate %20, %21, %22, %23, %24, %25, %26, %27, %28 in 2 : vector<8x8x128xf32>, vector<8x8x128xf32>, vector<8x8x128xf32>, vector<8x8x128xf32>, vector<8x8x128xf32>, vector<8x8x128xf32>, vector<8x8x128xf32>, vector<8x8x128xf32>, vector<8x8x128xf32> -> vector<8x8x1152xf32>
    %30 = vector.shape_cast %29 : vector<8x8x1152xf32> to vector<64x1152xf32>
    %31 = arith.truncf %30 : vector<64x1152xf32> to vector<64x1152xbf16>
    %c0_51 = arith.constant 0 : index
    %c0_52 = arith.constant 0 : index
    %32 = vector.load %arg4[%c0_51, %c0_52] : memref<1152x128xbf16, #tpu.memory_space<vmem>>, vector<1152x128xbf16>
    %cst_53 = arith.constant dense<0.000000e+00> : vector<64x128xf32>
    %33 = tpu.matmul %31, %32, %cst_53 {dimension_numbers = #tpu.dot_dimension_numbers<[1], [0], [0], [1], [0, 0, 1, 1], [], []>} : vector<64x1152xbf16>, vector<1152x128xbf16>, vector<64x128xf32> -> vector<64x128xf32>
    %c0_54 = arith.constant 0 : index
    %c0_55 = arith.constant 0 : index
    %34 = vector.load %arg5[%c0_54, %c0_55] : memref<1x128xf32, #tpu.memory_space<vmem>>, vector<1x128xf32>
    %35 = vector.broadcast %34 : vector<1x128xf32> to vector<64x128xf32>
    %36 = arith.addf %33, %35 : vector<64x128xf32>
    %cst_56 = arith.constant 0.000000e+00 : f32
    %37 = vector.broadcast %cst_56 : f32 to vector<64x128xf32>
    %38 = arith.maximumf %36, %37 : vector<64x128xf32>
    %39 = arith.truncf %38 : vector<64x128xf32> to vector<64x128xbf16>
    %c0_57 = arith.constant 0 : index
    %c0_58 = arith.constant 0 : index
    %40 = vector.load %arg6[%c0_57, %c0_58] : memref<128x128xbf16, #tpu.memory_space<vmem>>, vector<128x128xbf16>
    %cst_59 = arith.constant dense<0.000000e+00> : vector<64x128xf32>
    %41 = tpu.matmul %39, %40, %cst_59 {dimension_numbers = #tpu.dot_dimension_numbers<[1], [0], [0], [1], [0, 0, 1, 1], [], []>} : vector<64x128xbf16>, vector<128x128xbf16>, vector<64x128xf32> -> vector<64x128xf32>
    %c0_60 = arith.constant 0 : index
    %c0_61 = arith.constant 0 : index
    %42 = vector.load %arg7[%c0_60, %c0_61] : memref<1x128xf32, #tpu.memory_space<vmem>>, vector<1x128xf32>
    %43 = vector.broadcast %42 : vector<1x128xf32> to vector<64x128xf32>
    %44 = arith.addf %41, %43 : vector<64x128xf32>
    %cst_62 = arith.constant dense<0.000000e+00> : vector<128xf32>
    %45 = vector.multi_reduction <add>, %44, %cst_62 [0] : vector<64x128xf32> to vector<128xf32>
    %46 = vector.shape_cast %45 : vector<128xf32> to vector<1x128xf32>
    %cst_63 = arith.constant 6.400000e+01 : f32
    %47 = vector.broadcast %cst_63 : f32 to vector<1x128xf32>
    %48 = arith.divf %46, %47 : vector<1x128xf32>
    %49 = arith.truncf %48 : vector<1x128xf32> to vector<1x128xbf16>
    %c0_64 = arith.constant 0 : index
    %c0_65 = arith.constant 0 : index
    %50 = vector.load %arg8[%c0_64, %c0_65] : memref<128x128xbf16, #tpu.memory_space<vmem>>, vector<128x128xbf16>
    %cst_66 = arith.constant dense<0.000000e+00> : vector<1x128xf32>
    %51 = tpu.matmul %49, %50, %cst_66 {dimension_numbers = #tpu.dot_dimension_numbers<[1], [0], [0], [1], [0, 0, 1, 1], [], []>} : vector<1x128xbf16>, vector<128x128xbf16>, vector<1x128xf32> -> vector<1x128xf32>
    %cst_67 = arith.constant 0.000000e+00 : f32
    %52 = vector.broadcast %cst_67 : f32 to vector<1x128xf32>
    %53 = arith.maximumf %51, %52 : vector<1x128xf32>
    %54 = arith.truncf %53 : vector<1x128xf32> to vector<1x128xbf16>
    %c0_68 = arith.constant 0 : index
    %c0_69 = arith.constant 0 : index
    %55 = vector.load %arg9[%c0_68, %c0_69] : memref<128x128xbf16, #tpu.memory_space<vmem>>, vector<128x128xbf16>
    %cst_70 = arith.constant dense<0.000000e+00> : vector<1x128xf32>
    %56 = tpu.matmul %54, %55, %cst_70 {dimension_numbers = #tpu.dot_dimension_numbers<[1], [0], [0], [1], [0, 0, 1, 1], [], []>} : vector<1x128xbf16>, vector<128x128xbf16>, vector<1x128xf32> -> vector<1x128xf32>
    %57 = arith.negf %56 : vector<1x128xf32>
    %58 = math.exp %57 : vector<1x128xf32>
    %cst_71 = arith.constant 1.000000e+00 : f32
    %59 = vector.broadcast %cst_71 : f32 to vector<1x128xf32>
    %60 = arith.addf %59, %58 : vector<1x128xf32>
    %61 = arith.divf %59, %60 : vector<1x128xf32>
    %62 = vector.broadcast %61 : vector<1x128xf32> to vector<64x128xf32>
    %63 = arith.mulf %44, %62 : vector<64x128xf32>
    %64 = arith.addf %63, %1 : vector<64x128xf32>
    %cst_72 = arith.constant 0.000000e+00 : f32
    %65 = vector.broadcast %cst_72 : f32 to vector<64x128xf32>
    %66 = arith.maximumf %64, %65 : vector<64x128xf32>
    %67 = vector.shape_cast %66 : vector<64x128xf32> to vector<1x8x8x128xf32>
    %c0_73 = arith.constant 0 : index
    %c0_74 = arith.constant 0 : index
    %c0_75 = arith.constant 0 : index
    %c0_76 = arith.constant 0 : index
    %68 = vector.load %arg10[%c0_73, %c0_74, %c0_75, %c0_76] : memref<1x8x8x128xf32, #tpu.memory_space<vmem>>, vector<1x8x8x128xf32>
    tpu.vector_store %arg10[%c0_73, %c0_74, %c0_75, %c0_76], %67 {strides = array<i32>} : memref<1x8x8x128xf32, #tpu.memory_space<vmem>>, vector<1x8x8x128xf32>,
    return
  }
  func.func @transform_0(%arg0: i32) -> (i32, i32, i32, i32) {
    %c0_i32 = arith.constant 0 : i32
    %c0_i32_0 = arith.constant 0 : i32
    %c0_i32_1 = arith.constant 0 : i32
    %c0_i32_2 = arith.constant 0 : i32
    return %arg0, %c0_i32, %c0_i32_0, %c0_i32_1 : i32, i32, i32, i32
  }
  func.func @transform_1(%arg0: i32) -> (i32, i32) {
    %c0_i32 = arith.constant 0 : i32
    %c0_i32_0 = arith.constant 0 : i32
    %c0_i32_1 = arith.constant 0 : i32
    return %c0_i32, %c0_i32_0 : i32, i32
  }
  func.func @transform_2(%arg0: i32) -> (i32, i32) {
    %c0_i32 = arith.constant 0 : i32
    %c0_i32_0 = arith.constant 0 : i32
    %c0_i32_1 = arith.constant 0 : i32
    return %c0_i32, %c0_i32_0 : i32, i32
  }
  func.func @transform_3(%arg0: i32) -> (i32, i32) {
    %c0_i32 = arith.constant 0 : i32
    %c0_i32_0 = arith.constant 0 : i32
    %c0_i32_1 = arith.constant 0 : i32
    return %c0_i32, %c0_i32_0 : i32, i32
  }
  func.func @transform_4(%arg0: i32) -> (i32, i32) {
    %c0_i32 = arith.constant 0 : i32
    %c0_i32_0 = arith.constant 0 : i32
    %c0_i32_1 = arith.constant 0 : i32
    return %c0_i32, %c0_i32_0 : i32, i32
  }
  func.func @transform_5(%arg0: i32) -> (i32, i32) {
    %c0_i32 = arith.constant 0 : i32
    %c0_i32_0 = arith.constant 0 : i32
    %c0_i32_1 = arith.constant 0 : i32
    return %c0_i32, %c0_i32_0 : i32, i32
  }
  func.func @transform_6(%arg0: i32) -> (i32, i32) {
    %c0_i32 = arith.constant 0 : i32
    %c0_i32_0 = arith.constant 0 : i32
    %c0_i32_1 = arith.constant 0 : i32
    return %c0_i32, %c0_i32_0 : i32, i32
  }
  func.func @transform_7(%arg0: i32) -> (i32, i32) {
    %c0_i32 = arith.constant 0 : i32
    %c0_i32_0 = arith.constant 0 : i32
    %c0_i32_1 = arith.constant 0 : i32
    return %c0_i32, %c0_i32_0 : i32, i32
  }
  func.func @transform_8(%arg0: i32) -> (i32, i32) {
    %c0_i32 = arith.constant 0 : i32
    %c0_i32_0 = arith.constant 0 : i32
    %c0_i32_1 = arith.constant 0 : i32
    return %c0_i32, %c0_i32_0 : i32, i32
  }
  func.func @transform_9(%arg0: i32) -> (i32, i32, i32, i32) {
    %c0_i32 = arith.constant 0 : i32
    %c0_i32_0 = arith.constant 0 : i32
    %c0_i32_1 = arith.constant 0 : i32
    %c0_i32_2 = arith.constant 0 : i32
    return %arg0, %c0_i32, %c0_i32_0, %c0_i32_1 : i32, i32, i32, i32
  }
}

</mosaic_0001>

<bundles_post_ra>
// kernel: tpu_custom_call.1
= control target key start
LH: loop header
LB: loop body
LE: loop exit
PB: predicated region body
PF: predicated region fallthrough
CT: control target
= control target key end

     0   :  { %s3673_s0 = inlined_call_operand.hbm [shape: f32[2,8,8,128], index: 0, kind: input, shape index: {}]   ;;  %s3674_s1 = inlined_call_operand.hbm [shape: bf16[128,128], index: 1, kind: input, shape index: {}]   ;;  %s3675_s2 = inlined_call_operand.vmem [shape: f32[1,128], index: 2, kind: input, shape index: {}]   ;;  %s3676_s3 = inlined_call_operand.hbm [shape: bf16[1152,128], index: 3, kind: input, shape index: {}]   ;;  %s3677_s4 = inlined_call_operand.vmem [shape: f32[1,128], index: 4, kind: input, shape index: {}]   ;;  %s3678_s5 = inlined_call_operand.hbm [shape: bf16[128,128], index: 5, kind: input, shape index: {}]   ;;  %s3679_s6 = inlined_call_operand.vmem [shape: f32[1,128], index: 6, kind: input, shape index: {}]   ;;  %s3680_s7 = inlined_call_operand.hbm [shape: bf16[128,128], index: 7, kind: input, shape index: {}]   ;;  %s3681_s8 = inlined_call_operand.hbm [shape: bf16[128,128], index: 8, kind: input, shape index: {}]   ;;  %s3682_s9 = inlined_call_operand.hbm [shape: f32[2,8,8,128], index: 9, kind: output, shape index: {}]  }
   0x1   :  { %3687 = sst [smem:[#allocation20_spill]] %s3674_s1 }
   0x2   :  { %3688 = sst [smem:[#allocation21_spill]] %s3682_s9 }
   0x3   :  { %14 = vsyncpa [#allocation4], 0 }
   0x4   :  { %16 = vsyncpa [#allocation4 + $0x1], 0 }
   0x5   :  { %17 = vsyncpa [#allocation7], 0 }
   0x6   :  { %18 = vsyncpa [#allocation10], 0 }
   0x7   :  { %19 = vsyncpa [#allocation13], 0 }
   0x8   :  { %20 = vsyncpa [#allocation5], 0 }
   0x9   :  { %22 = vsyncpa [#allocation5 + $0x1], 0  ;;  %s3175_s30 = smov 0   ;;  %s3177_s10 = smov 0  }
   0xa   :  { %s3179_s11 = smov 0   ;;  %s3181_s12 = smov 0  }
   0xb LB: > { %s3110_s13 = smov [#allocation6]   ;;  %s3196_s15 = sadd.s32 4294967295, %s3108_s12   ;;  %s3108_s12 = sphi %s3181_s12, %s3712_s12   ;;  %s3104_s11 = sphi %s3179_s11, %s3711_s11   ;;  %s3100_s10 = sphi %s3177_s10, %s3710_s10   ;;  %s3096_s30 = sphi %s3175_s30, %s3709_s30  }
   0xc   : > { %s265_s14 = sshll.u32 %s3110_s13, 4  ;;  %p2180_p0 = scmp.ge.s32.totalorder %s3108_s12, 1  ;;  %s3201_s14 = int_to_ptr.vmem [resolvable:$true] %s265_s14 }
   0xd   : > { %p3684_p1 = scmp.eq.s32.totalorder %s3196_s15, 0  ;;  %p253_p2 = scmp.lt.s32.totalorder %s3108_s12, 3 }
   0xe   : > { %s3111_s17 = smov [#allocation9]   ;;  %s3112_s20 = smov [#allocation8]  }
   0xf   : > { %p3203_p3 = pnand %p2180_p0, %p253_p2  ;;  %s297_s18 = sshll.u32 %s3111_s17, 4  ;;  %s3216_s18 = int_to_ptr.vmem [resolvable:$true] %s297_s18 }
  0x10   : > { %s281_s21 = sshll.u32 %s3112_s20, 4  ;;  %s3691_s1 = sld [smem:[#allocation20_spill]]  ;;  %s3218_s21 = int_to_ptr.vmem [resolvable:$true] %s281_s21 }
  0x11   : > { %s3689_s16 = scalar_select %p3203_p3, 1, 0 }
  0x12   : > { %p2663_p5 = pneg %p3203_p3 }
  0x14   : > { %p3212_p6 = pnand %p2663_p5, %p3684_p1 }
  0x16   : > { %s2860_s24 = scalar_lea.hbm %s3691_s1, 1024  ;;  %p3228_p8 = pneg %p3212_p6 }
  0x17   : > { %p2861_p7 = scmp.ne.s32.totalorder %s3691_s1, %s2860_s24  ;;  %p2867_p11 = scmp.lt.u32.totalorder %s2860_s24, %s3691_s1 }
  0x19   : > { %p2863_p9 = pnand %p3228_p8, %p2861_p7 }
  0x1b   : > { %p2864_p10 = pneg %p2863_p9 }
  0x1d   : > { %p2869_p12 = pnand %p2867_p11, %p2864_p10 }
  0x1f   : > { %2872 = shalt.err (!%p2869_p12)
}
  0x20   : > { %s2873_s13 = scalar_lea.vmem %s3201_s14, 1024  ;;  %p2881_p5 = scmp.lt.s32.totalorder %s3201_s14, %s3201_s14 }
  0x21   : > { %p2874_p13 = scmp.ne.s32.totalorder %s3201_s14, %s2873_s13  ;;  %p2882_p4 = scmp.lt.s32.totalorder %s2873_s13, %s2873_s13 }
  0x23   : > { %p2876_p0 = pnand %p2874_p13, %p3228_p8  ;;  %p2883_p7 = por %p2882_p4, %p2881_p5 }
  0x25   : > { %p2877_p2 = pneg %p2876_p0 }
  0x27   : > { %p2884_p9 = pnand %p2883_p7, %p2877_p2 }
  0x29   : > { %2887 = shalt.err (!%p2884_p9)
}
  0x2a   : > { %s3113_s17 = smov 64   ;;  %s3114_s20 = smov 4  }
  0x2b   : > { %2666 = dma.hbm_to_vmem [thread:$0]  (!%p3212_p6), %s3691_s1, 1024, %s3201_s14, [#allocation7], %s3113_s17, %s3113_s17, %s3114_s20  }
  0x2c   : > { %s2888_s26 = scalar_lea.hbm %s3678_s5, 1024 }
  0x2d   : > { %p2889_p4 = scmp.ne.s32.totalorder %s3678_s5, %s2888_s26  ;;  %p2895_p12 = scmp.lt.u32.totalorder %s2888_s26, %s3678_s5 }
  0x2f   : > { %p2891_p10 = pnand %p2889_p4, %p3228_p8 }
  0x31   : > { %p2892_p11 = pneg %p2891_p10 }
  0x33   : > { %p2897_p13 = pnand %p2895_p12, %p2892_p11 }
  0x35   : > { %2900 = shalt.err (!%p2897_p13)
}
  0x36   : > { %s2901_s14 = scalar_lea.vmem %s3216_s18, 1024  ;;  %p2909_p7 = scmp.lt.s32.totalorder %s3216_s18, %s3216_s18 }
  0x37   : > { %p2902_p0 = scmp.ne.s32.totalorder %s3216_s18, %s2901_s14  ;;  %p2910_p9 = scmp.lt.s32.totalorder %s2901_s14, %s2901_s14 }
  0x39   : > { %p2904_p2 = pnand %p2902_p0, %p3228_p8  ;;  %p2911_p4 = por %p2910_p9, %p2909_p7 }
  0x3b   : > { %p2905_p5 = pneg %p2904_p2 }
  0x3d   : > { %p2912_p10 = pnand %p2911_p4, %p2905_p5 }
  0x3f   : > { %2915 = shalt.err (!%p2912_p10)
}
  0x40   : > { %2672 = dma.hbm_to_vmem [thread:$0]  (!%p3212_p6), %s3678_s5, 1024, %s3216_s18, [#allocation10], %s3113_s17, %s3113_s17, %s3114_s20  }
  0x41   : > { %s2916_s25 = scalar_lea.hbm %s3676_s3, 9216 }
  0x42   : > { %p2917_p11 = scmp.ne.s32.totalorder %s3676_s3, %s2916_s25  ;;  %p2923_p0 = scmp.lt.u32.totalorder %s2916_s25, %s3676_s3 }
  0x44   : > { %p2919_p12 = pnand %p2917_p11, %p3228_p8 }
  0x46   : > { %p2920_p13 = pneg %p2919_p12 }
  0x48   : > { %p2925_p2 = pnand %p2923_p0, %p2920_p13 }
  0x4a   : > { %2928 = shalt.err (!%p2925_p2)
}
  0x4b   : > { %s2929_s18 = scalar_lea.vmem %s3218_s21, 9216  ;;  %p2937_p4 = scmp.lt.s32.totalorder %s3218_s21, %s3218_s21 }
  0x4c   : > { %p2930_p5 = scmp.ne.s32.totalorder %s3218_s21, %s2929_s18  ;;  %p2938_p10 = scmp.lt.s32.totalorder %s2929_s18, %s2929_s18 }
  0x4e   : > { %p2932_p7 = pnand %p2930_p5, %p3228_p8  ;;  %p2939_p11 = por %p2938_p10, %p2937_p4 }
  0x50   : > { %p2933_p9 = pneg %p2932_p7 }
  0x52   : > { %p2940_p12 = pnand %p2939_p11, %p2933_p9 }
  0x54   : > { %2943 = shalt.err (!%p2940_p12)
}
  0x55   : > { %2669 = dma.hbm_to_vmem [thread:$0]  (!%p3212_p6), %s3676_s3, 9216, %s3218_s21, [#allocation7], %s3113_s17, %s3113_s17, %s3114_s20  }
  0x56   : > { %s3115_s22 = smov [#allocation11]   ;;  %s3116_s24 = smov [#allocation12]  }
  0x57   : > { %s313_s23 = sshll.u32 %s3115_s22, 4  ;;  %s326_s25 = sshll.u32 %s3116_s24, 4  ;;  %s314_s23 = int_to_ptr.vmem [resolvable:$true] %s313_s23  ;;  %s327_s25 = int_to_ptr.vmem [resolvable:$true] %s326_s25 }
  0x58   : > { %s2944_s29 = scalar_lea.hbm %s3680_s7, 1024 }
  0x59   : > { %p2945_p13 = scmp.ne.s32.totalorder %s3680_s7, %s2944_s29  ;;  %p2951_p5 = scmp.lt.u32.totalorder %s2944_s29, %s3680_s7 }
  0x5b   : > { %p2947_p0 = pnand %p2945_p13, %p3228_p8 }
  0x5d   : > { %p2948_p2 = pneg %p2947_p0 }
  0x5f   : > { %p2953_p7 = pnand %p2951_p5, %p2948_p2 }
  0x61   : > { %2956 = shalt.err (!%p2953_p7)
}
  0x62   : > { %s2957_s21 = scalar_lea.vmem %s314_s23, 1024  ;;  %p2965_p11 = scmp.lt.s32.totalorder %s314_s23, %s314_s23 }
  0x63   : > { %p2958_p9 = scmp.ne.s32.totalorder %s314_s23, %s2957_s21  ;;  %p2966_p12 = scmp.lt.s32.totalorder %s2957_s21, %s2957_s21 }
  0x65   : > { %p2960_p4 = pnand %p2958_p9, %p3228_p8  ;;  %p2967_p1 = por %p2966_p12, %p2965_p11 }
  0x67   : > { %p2961_p10 = pneg %p2960_p4 }
  0x69   : > { %p2968_p3 = pnand %p2967_p1, %p2961_p10 }
  0x6b   : > { %2971 = shalt.err (!%p2968_p3)
}
  0x6c   : > { %2675 = dma.hbm_to_vmem [thread:$0]  (!%p3212_p6), %s3680_s7, 1024, %s314_s23, [#allocation10], %s3113_s17, %s3113_s17, %s3114_s20  }
  0x6d   : > { %s2972_s26 = scalar_lea.hbm %s3681_s8, 1024 }
  0x6e   : > { %p2973_p1 = scmp.ne.s32.totalorder %s3681_s8, %s2972_s26  ;;  %p2979_p0 = scmp.lt.u32.totalorder %s2972_s26, %s3681_s8 }
  0x70   : > { %p2975_p3 = pnand %p2973_p1, %p3228_p8 }
  0x72   : > { %p2976_p13 = pneg %p2975_p3 }
  0x74   : > { %p2981_p2 = pnand %p2979_p0, %p2976_p13 }
  0x76   : > { %2984 = shalt.err (!%p2981_p2)
}
  0x77   : > { %s2985_s14 = scalar_lea.vmem %s327_s25, 1024  ;;  %p2993_p4 = scmp.lt.s32.totalorder %s327_s25, %s327_s25 }
  0x78   : > { %p2986_p5 = scmp.ne.s32.totalorder %s327_s25, %s2985_s14  ;;  %p2994_p10 = scmp.lt.s32.totalorder %s2985_s14, %s2985_s14 }
  0x7a   : > { %p2988_p7 = pnand %p2986_p5, %p3228_p8  ;;  %p2995_p11 = por %p2994_p10, %p2993_p4 }
  0x7c   : > { %p2989_p9 = pneg %p2988_p7 }
  0x7e   : > { %p2996_p12 = pnand %p2995_p11, %p2989_p9 }
  0x80   : > { %2999 = shalt.err (!%p2996_p12)
}
  0x81   : > { %2678 = dma.hbm_to_vmem [thread:$0]  (!%p3212_p6), %s3681_s8, 1024, %s327_s25, [#allocation13], %s3113_s17, %s3113_s17, %s3114_s20  }
  0x82   : > { %s2179_s19 = sadd.s32 4294967294, %s3108_s12   ;;  %s3348_s27 = sadd.s32 1, %s3108_s12  }
  0x83   : > { %s35_s1 = sadd.s32 1, %s3104_s11  ;;  %s32_s9 = ssub.s32 %s3108_s12, %s3348_s27 }
  0x84   : > { %p42_p8 = scmp.ne.s32.totalorder %s3104_s11, %s3100_s10  ;;  %p33_p1 = scmp.eq.s32.totalorder %s32_s9, 0 }
  0x85   : > { %p43_p3 = scmp.eq.s32.totalorder %s3108_s12, 0  ;;  %p48_p13 = scmp.ne.s32.totalorder %s3100_s10, %s3096_s30 }
  0x86   : > { %p240_p0 = scmp.eq.s32.totalorder %s3196_s15, 1  ;;  %p3693_p5 = scmp.eq.s32.totalorder %s3196_s15, 0 }
  0x87   : > { %s3360_s22 = scalar_select %p33_p1, %s3104_s11, %s35_s1  }
  0x88   : > { %p44_p2 = por %p43_p3, %p42_p8  ;;  %p3364_p7 = por %p3693_p5, %p48_p13 }
  0x89   : > { %p3368_p6 = por %p240_p0, %p42_p8  ;;  %p246_p9 = scmp.eq.s32.totalorder %s2179_s19, 1 }
  0x8a   : > { %p2692_p4 = scmp.lt.s32.totalorder %s3108_s12, 2  ;;  %s340_s20 = sand.u32 1, %s3104_s11  }
  0x8b   : > { %s3695_s17 = scalar_select %p3368_p6, 1, 0 }
  0x8c   : > { %p3374_p10 = por %p246_p9, %p48_p13  ;;  %s2187_s26 = sshll.u32 %s340_s20, 6 }
  0x8d   : > { %s2311_s28 = sshll.u32 %s3108_s12, 10  ;;  %s344_s14 = scalar_lea.vmem [#allocation3], %s2187_s26 }
  0x8e   : > { %s3696_s25 = scalar_select %p3374_p10, 1, 0 }
  0x8f   : > { %s3382_s18 = scalar_lea.hbm %s3673_s0, %s2311_s28  ;;  %s351_s23 = sshll.u32 %s344_s14, 4  ;;  %s3388_s23 = int_to_ptr.vmem [resolvable:$true] %s351_s23 }
  0x90   : > { %p3384_p11 = pnand %p2692_p4, %p44_p2  ;;  %s3390_s19 = scalar_lea.sflag [#allocation4], %s340_s20 }
  0x91   : > { %s3000_s1 = scalar_lea.hbm %s3382_s18, 1024  ;;  %s3005_s28 = scalar_lea.hbm %s3673_s0, 2048 }
  0x92   : > { %p3001_p12 = scmp.ne.s32.totalorder %s3382_s18, %s3000_s1  ;;  %p3002_p8 = pneg %p3384_p11 }
  0x93   : > { %p3006_p13 = scmp.lt.u32.totalorder %s3382_s18, %s3673_s0  ;;  %p3007_p0 = scmp.lt.u32.totalorder %s3005_s28, %s3000_s1 }
  0x94   : > { %p3003_p1 = pnand %p3002_p8, %p3001_p12  ;;  %p3009_p5 = scmp.lt.u32.totalorder %s3000_s1, %s3382_s18 }
  0x95   : > { %p3008_p2 = por %p3007_p0, %p3006_p13 }
  0x96   : > { %p3004_p3 = pneg %p3003_p1 }
  0x97   : > { %p3010_p9 = por %p3009_p5, %p3008_p2 }
  0x99   : > { %p3011_p4 = pnand %p3010_p9, %p3004_p3 }
  0x9b   : > { %3014 = shalt.err (!%p3011_p4)
}
  0x9c   : > { %s3015_s20 = scalar_lea.vmem %s3388_s23, 1024  ;;  %s3117_s14 = smov [#allocation3]  }
  0x9d   : > { %p3016_p12 = scmp.ne.s32.totalorder %s3388_s23, %s3015_s20  ;;  %s3020_s9 = sshll.u32 %s3117_s14, 4  ;;  %s3021_s9 = int_to_ptr.vmem [resolvable:$false] %s3020_s9 }
  0x9e   : > { %s3022_s26 = scalar_lea.vmem %s3021_s9, 2048  ;;  %p3023_p6 = scmp.lt.s32.totalorder %s3388_s23, %s3021_s9 }
  0x9f   : > { %p3018_p1 = pnand %p3016_p12, %p3002_p8  ;;  %p3024_p13 = scmp.lt.s32.totalorder %s3022_s26, %s3015_s20 }
  0xa1   : > { %p3019_p10 = pneg %p3018_p1  ;;  %p3025_p0 = por %p3024_p13, %p3023_p6 }
  0xa3   : > { %p3026_p2 = pnand %p3025_p0, %p3019_p10 }
  0xa5   : > { %3029 = shalt.err (!%p3026_p2)
}
  0xa6   : > { %s3118_s1 = smov 128   ;;  %s3119_s28 = smov 8  }
  0xa7   : > { %2682 = dma.hbm_to_vmem [thread:$0]  (!%p3384_p11), %s3382_s18, 1024, %s3388_s23, %s3390_s19, %s3118_s1, %s3118_s1, %s3119_s28  }
  0xa8   : > { %p3698_p8 = scmp.ne.s32.totalorder %s3689_s16, 0 }
  0xa9   : > { %s3421_s29 = sand.u32 (!%p3698_p8), 1, %s3100_s10  }
  0xaa   : > { %363 = sbr.rel (%p3698_p8) target bundleno = 1461 (0x5b5), region = 56  ;;  %s2191_s13 = sshll.u32 (!%p3698_p8), %s3421_s29, 6 }
  0xab   : > { %s366_s20 = scalar_lea.sflag (!%p3698_p8), [#allocation4], %s3421_s29  ;;  %s3427_s14 = scalar_lea.vmem (!%p3698_p8), [#allocation3], %s2191_s13 }
  0xb1   : > { %3075 = dma.done.wait (%p3364_p7), %s366_s20, 1024  }
  0xb2   : > { %3077 = vsyncadd (%p3364_p7), %s366_s20, 4294966272  ;;  %p3699_p6 = scmp.eq.s32.totalorder %s3196_s15, 0 }
  0xb4   : > { %3079 = dma.done.wait (%p3699_p6), [#allocation7], 10240   ;;  %p3700_p10 = pmov %p3699_p6 }
  0xb5   : > { %p3701_p11 = pmov %p3699_p6 }
  0xb6   : > { %3081 = vsyncadd (%p3700_p10), [#allocation7], 4294957056 }
  0xb7   : > { %3083 = dma.done.wait (%p3701_p11), [#allocation10], 2048   ;;  %p3702_p3 = pmov %p3699_p6 }
  0xb9   : > { %3085 = vsyncadd (%p3702_p3), [#allocation10], 4294965248  ;;  %p3703_p5 = pmov %p3702_p3 }
  0xba   : > { %p3704_p9 = pmov %p3702_p3 }
  0xbb   : > { %3087 = dma.done.wait (%p3703_p5), [#allocation13], 1024  }
  0xbc   : > { %3089 = vsyncadd (%p3704_p9), [#allocation13], 4294966272  ;;  %v2744_v0 = vld [vmem:[#allocation6] sm:$0xff]   ;;  %v2745_v1 = vld [vmem:[#allocation6 + $0x8] sm:$0xff]   ;;  %v3120_v37 = vmov 0.0   ;;  %vm3121_vm0 = vmmov 0  }
  0xbd   : > { %2527 = vmatprep.subr.bf16.mxu0 %v2744_v0  ;;  %v2746_v2 = vld [vmem:[#allocation6 + $0x10] sm:$0xff]   ;;  %v2747_v3 = vld [vmem:[#allocation6 + $0x18] sm:$0xff]   ;;  %v425_v4 = vld [vmem:[%s3427_s14] sm:$0xff]  ;;  %581 = vst [vmem:[#allocation2] sm:$0xff] %v3120_v37  ;;  %s2312_s9 = sshll.u32 %s3196_s15, 10  ;;  %s3605_s26 = scalar_lea.vmem [#allocation14], %s2191_s13 }
  0xbe   : > { %2528 = vmatpush3.bf16.msra.mxu0 %v2744_v0  ;;  %v426_v5 = vld [vmem:[%s3427_s14 + $0x8] sm:$0xff]  ;;  %v2748_v7 = vld [vmem:[#allocation6 + $0x20] sm:$0xff]   ;;  %v2759_v13 = vld [vmem:[#allocation8 + $0x50] sm:$0xff]   ;;  %582 = vst [vmem:[#allocation2 + $0x8] sm:$0x3] %v3120_v37  ;;  %s2058_s1 = sshll.u32 %s3605_s26, 4  ;;  %s3621_s1 = int_to_ptr.vmem [resolvable:$true] %s2058_s1 }
  0xbf   : > { %2529 = vmatprep.subr.bf16.mxu0 %v2745_v1  ;;  %v433_v6 = vpack.c.bf16 %v426_v5, %v425_v4  ;;  %v2752_v8 = vld [vmem:[#allocation8 + $0x40] sm:$0xff]   ;;  %v2755_v10 = vld [vmem:[#allocation8 + $0x48] sm:$0xff]   ;;  %v2750_v14 = vld [vmem:[#allocation6 + $0x30] sm:$0xff]   ;;  %584 = vst [vmem:[#allocation2 + $0x90] sm:$0xff] %v3120_v37  ;;  %s3705_s13 = sld [smem:[#allocation21_spill]]  ;;  %s3030_s16 = scalar_lea.vmem %s3621_s1, 1024 }
  0xc0   : > { %v2753_v9 = vld [vmem:[#allocation8] sm:$0xff]   ;;  %2325 = vmatprep.subr.bf16.mxu1 %v2752_v8  ;;  %v2749_v11 = vld [vmem:[#allocation6 + $0x28] sm:$0xff]   ;;  %v2761_v15 = vld [vmem:[#allocation8 + $0x10] sm:$0xff]   ;;  %585 = vst [vmem:[#allocation2 + $0x98] sm:$0x3] %v3120_v37  ;;  %p3031_p7 = scmp.ne.s32.totalorder %s3621_s1, %s3030_s16  ;;  %p3706_p4 = scmp.ne.s32.totalorder %s3695_s17, 0 }
  0xc1   : > { %2543 = vmatprep.mubr.bf16.mxu0 %v433_v6  ;;  %2326 = vmatpush3.bf16.msra.mxu1 %v2753_v9  ;;  %v2757_v12 = vld [vmem:[#allocation8 + $0x8] sm:$0xff]   ;;  %v2763_v16 = vld [vmem:[#allocation8 + $0x58] sm:$0xff]   ;;  %v427_v19 = vld [vmem:[%s3427_s14 + $0x10] sm:$0xff]  ;;  %587 = vst [vmem:[#allocation2 + $0x10] sm:$0x1] %v3120_v37  ;;  %s3122_s24 = smov [#allocation14]  }
  0xc2   : > { %2530 = vmatpush3.bf16.msra.mxu0 %v2745_v1  ;;  %2327 = vmatprep.subr.bf16.mxu1 %v2755_v10  ;;  %v2751_v17 = vld [vmem:[#allocation6 + $0x38] sm:$0xff]   ;;  %v429_v21 = vld [vmem:[%s3427_s14 + $0x20] sm:$0xff]  ;;  %v430_v22 = vld [vmem:[%s3427_s14 + $0x28] sm:$0xff]  ;;  %588 = vst [vmem:[#allocation2 + $0x20] sm:$0x1] %v3120_v37  ;;  %p3032_p12 = pnand %p3031_p7, %p3706_p4  ;;  %s3034_s18 = sshll.u32 %s3122_s24, 4  ;;  %s3035_s18 = int_to_ptr.vmem [resolvable:$false] %s3034_s18 }
  0xc3   : > { %2531 = vmatprep.subr.bf16.mxu0 %v2746_v2  ;;  %v2765_v18 = vld [vmem:[#allocation8 + $0x18] sm:$0xff]   ;;  %v2754_v23 = vld [vmem:[#allocation8 + $0xc0] sm:$0xff]   ;;  %v2758_v26 = vld [vmem:[#allocation8 + $0xc8] sm:$0xff]   ;;  %v435_v27 = vpack.c.bf16 %v430_v22, %v429_v21  ;;  %589 = vst [vmem:[#allocation2 + $0x30] sm:$0x1] %v3120_v37  ;;  %s3036_s23 = scalar_lea.vmem %s3035_s18, 2048  ;;  %p3037_p13 = scmp.lt.s32.totalorder %s3621_s1, %s3035_s18 }
  0xc4   : > { %v428_v20 = vld [vmem:[%s3427_s14 + $0x18] sm:$0xff]  ;;  %v2756_v24 = vld [vmem:[#allocation8 + $0x80] sm:$0xff]   ;;  %v431_v28 = vld [vmem:[%s3427_s14 + $0x30] sm:$0xff]  ;;  %590 = vst [vmem:[#allocation2 + $0x40] sm:$0x1] %v3120_v37  ;;  %p3033_p1 = pneg %p3032_p12  ;;  %p3038_p0 = scmp.lt.s32.totalorder %s3036_s23, %s3030_s16 }
  0xc5   : > { %2328 = vmatpush3.bf16.msra.mxu1 %v2757_v12  ;;  %v434_v25 = vpack.c.bf16 %v428_v20, %v427_v19  ;;  %v432_v29 = vld [vmem:[%s3427_s14 + $0x38] sm:$0xff]  ;;  %v2760_v30 = vld [vmem:[#allocation8 + $0x88] sm:$0xff]   ;;  %v2762_v31 = vld [vmem:[#allocation8 + $0xd0] sm:$0xff]   ;;  %591 = vst [vmem:[#allocation2 + $0x50] sm:$0x1] %v3120_v37  ;;  %s3619_s20 = scalar_lea.hbm %s3705_s13, %s2312_s9 }
  0xc6   : > { %2532 = vmatpush3.bf16.msra.mxu0 %v2746_v2  ;;  %2329 = vmatprep.subr.bf16.mxu1 %v2759_v13  ;;  %v2764_v32 = vld [vmem:[#allocation8 + $0x90] sm:$0xff]   ;;  %v436_v33 = vpack.c.bf16 %v432_v29, %v431_v28  ;;  %v2766_v34 = vld [vmem:[#allocation8 + $0xd8] sm:$0xff]   ;;  %v2767_v35 = vld [vmem:[#allocation8 + $0x60] sm:$0xff]   ;;  %592 = vst [vmem:[#allocation2 + $0x60] sm:$0x1] %v3120_v37  ;;  %p3039_p2 = por %p3038_p0, %p3037_p13 }
  0xc7   : > { %2533 = vmatprep.subr.bf16.mxu0 %v2747_v3  ;;  %v2768_v36 = vld [vmem:[#allocation8 + $0x98] sm:$0xff]   ;;  %593 = vst [vmem:[#allocation2 + $0x70] sm:$0x1] %v3120_v37  ;;  %594 = vst [vmem:[#allocation2 + $0x80] sm:$0x1] %v3120_v37  ;;  %v2769_v38 = vld [vmem:[#allocation8 + $0x20] sm:$0xff]  }
  0xc8   : > { %595 = vst [vmem:[#allocation2 + $0x19] sm:$0x1] %v3120_v37  ;;  %596 = vst [vmem:[#allocation2 + $0x29] sm:$0x1] %v3120_v37  ;;  %v2770_v39 = vld [vmem:[#allocation8 + $0xe0] sm:$0xff]   ;;  %v2771_v40 = vld [vmem:[#allocation8 + $0x68] sm:$0xff]   ;;  %p3040_p8 = pnand %p3039_p2, %p3033_p1 }
  0xc9   : > { %2330 = vmatpush3.bf16.msra.mxu1 %v2761_v15  ;;  %597 = vst [vmem:[#allocation2 + $0x39] sm:$0x1] %v3120_v37  ;;  %598 = vst [vmem:[#allocation2 + $0x49] sm:$0x1] %v3120_v37  ;;  %v2772_v41 = vld [vmem:[#allocation8 + $0xa0] sm:$0xff]   ;;  %v2773_v42 = vld [vmem:[#allocation8 + $0x28] sm:$0xff]  }
  0xca   : > { %2534 = vmatpush3.bf16.msra.mxu0 %v2747_v3  ;;  %2331 = vmatprep.subr.bf16.mxu1 %v2763_v16  ;;  %599 = vst [vmem:[#allocation2 + $0x59] sm:$0x1] %v3120_v37  ;;  %600 = vst [vmem:[#allocation2 + $0x69] sm:$0x1] %v3120_v37  ;;  %v2774_v43 = vld [vmem:[#allocation8 + $0xe8] sm:$0xff]   ;;  %v2775_v44 = vld [vmem:[#allocation8 + $0x70] sm:$0xff]  }
  0xcb   : > { %2535 = vmatprep.subr.bf16.mxu0 %v2748_v7  ;;  %601 = vst [vmem:[#allocation2 + $0x79] sm:$0x1] %v3120_v37  ;;  %602 = vst [vmem:[#allocation2 + $0x89] sm:$0x1] %v3120_v37  ;;  %v2776_v45 = vld [vmem:[#allocation8 + $0xa8] sm:$0xff]   ;;  %v2777_v46 = vld [vmem:[#allocation8 + $0x30] sm:$0xff]  }
  0xcc   : > { %v2778_v47 = vld [vmem:[#allocation8 + $0xf0] sm:$0xff]   ;;  %v2779_v48 = vld [vmem:[#allocation8 + $0x78] sm:$0xff]   ;;  %v2784_v53 = vld [vmem:[#allocation8 + $0x140] sm:$0xff]  }
  0xcd   : > { %2332 = vmatpush3.bf16.msra.mxu1 %v2765_v18  ;;  %v2780_v49 = vld [vmem:[#allocation8 + $0xb0] sm:$0xff]   ;;  %v2781_v50 = vld [vmem:[#allocation8 + $0x38] sm:$0xff]   ;;  %v2786_v54 = vld [vmem:[#allocation8 + $0x1c0] sm:$0xff]  }
  0xce   : > { %2536 = vmatpush3.bf16.msra.mxu0 %v2748_v7  ;;  %2333 = vmatprep.subr.bf16.mxu1 %v2767_v35  ;;  %v2782_v51 = vld [vmem:[#allocation8 + $0xf8] sm:$0xff]   ;;  %v2198_v55 = vld [vmem:[%s3675_s2] ss:$0 sm:$0xff]  ;;  %v619_v0 = vld [vmem:[#allocation2 + $0x1] sm:$0xff] }
  0xcf   : > { %2537 = vmatprep.subr.bf16.mxu0 %v2749_v11  ;;  %v2783_v52 = vld [vmem:[#allocation8 + $0xb8] sm:$0xff]   ;;  %v2785_v21 = vld [vmem:[#allocation8 + $0x100] sm:$0xff]  }
  0xd1   : > { %2334 = vmatpush3.bf16.msra.mxu1 %v2769_v38  ;;  %v2790_v38 = vld [vmem:[#allocation8 + $0x1c8] sm:$0xff]  }
  0xd2   : > { %2538 = vmatpush3.bf16.msra.mxu0 %v2749_v11  ;;  %2335 = vmatprep.subr.bf16.mxu1 %v2771_v40 }
  0xd3   : > { %2539 = vmatprep.subr.bf16.mxu0 %v2750_v14 }
  0xd5   : > { %2336 = vmatpush3.bf16.msra.mxu1 %v2773_v42  ;;  %v2792_v42 = vld [vmem:[#allocation8 + $0x188] sm:$0xff]  }
  0xd6   : > { %2540 = vmatpush3.bf16.msra.mxu0 %v2750_v14  ;;  %2337 = vmatprep.subr.bf16.mxu1 %v2775_v44 }
  0xd7   : > { %2541 = vmatprep.subr.bf16.mxu0 %v2751_v17 }
  0xd9   : > { %2338 = vmatpush3.bf16.msra.mxu1 %v2777_v46  ;;  %v2794_v46 = vld [vmem:[#allocation8 + $0x1d0] sm:$0xff]  }
  0xda   : > { %2542 = vmatpush3.bf16.msra.mxu0 %v2751_v17  ;;  %2339 = vmatprep.subr.bf16.mxu1 %v2779_v48 }
  0xdb   : > { %2365 = vmatprep.subr.bf16.mxu0 %v2754_v23 }
  0xdd   : > { %2544 = vmatmul.mubr.bf16.vlgmr.msra.gmra.mrb[0].mxu0 %v434_v25  ;;  %2340 = vmatpush3.bf16.msra.mxu1 %v2781_v50 }
  0xde   : > { %2547 = vmatprep.mubr.bf16.mxu0 %v435_v27  ;;  %2366 = vmatpush3.bf16.msra.mxu0 %v2756_v24  ;;  %v627_v24 = vld [vmem:[#allocation2 + $0x2] sm:$0xff] }
  0xdf   : > { %2367 = vmatprep.subr.bf16.mxu0 %v2758_v26  ;;  %2405 = vmatprep.subr.bf16.mxu1 %v2784_v53  ;;  %v2787_v26 = vld [vmem:[#allocation8 + $0x148] sm:$0xff]  }
  0xe2   : > { %2368 = vmatpush3.bf16.msra.mxu0 %v2760_v30 }
  0xe3   : > { %2369 = vmatprep.subr.bf16.mxu0 %v2762_v31 }
  0xe5   : > { %2548 = vmatmul.mubr.bf16.gmra.mrb[4].mxu0 %v436_v33 }
  0xe6   : > { %2370 = vmatpush3.bf16.msra.mxu0 %v2764_v32  ;;  %v2788_v32 = vld [vmem:[#allocation8 + $0x180] sm:$0xff]  }
  0xe7   : > { %2371 = vmatprep.subr.bf16.mxu0 %v2766_v34 }
  0xea   : > { %2372 = vmatpush3.bf16.msra.mxu0 %v2768_v36  ;;  %v2789_v36 = vld [vmem:[#allocation8 + $0x108] sm:$0xff]  }
  0xeb   : > { %2373 = vmatprep.subr.bf16.mxu0 %v2770_v39 }
  0xee   : > { %2374 = vmatpush3.bf16.msra.mxu0 %v2772_v41  ;;  %v2791_v41 = vld [vmem:[#allocation8 + $0x150] sm:$0xff]  }
  0xef   : > { %2375 = vmatprep.subr.bf16.mxu0 %v2774_v43  ;;  %v2793_v43 = vld [vmem:[#allocation8 + $0x110] sm:$0xff]  }
  0xf2   : > { %2376 = vmatpush3.bf16.msra.mxu0 %v2776_v45 }
  0xf3   : > { %2377 = vmatprep.subr.bf16.mxu0 %v2778_v47  ;;  %v2795_v47 = vld [vmem:[#allocation8 + $0x158] sm:$0xff]  }
  0xf6   : > { %2378 = vmatpush3.bf16.msra.mxu0 %v2780_v49 }
  0xf7   : > { %2379 = vmatprep.subr.bf16.mxu0 %v2782_v51  ;;  %v2796_v51 = vld [vmem:[#allocation8 + $0x190] sm:$0xff]  }
  0xfa   : > { %2380 = vmatpush3.bf16.msra.mxu0 %v2783_v52 }
  0xfb   : > { %2445 = vmatprep.subr.bf16.mxu0 %v2786_v54  ;;  %v2797_v54 = vld [vmem:[#allocation8 + $0x118] sm:$0xff]  }
 0x1b0   : > { %v2545_v56 = vpop.f32.mrb[0].mxu0 }
 0x1b1   : > { %v551_v57 = vadd.f32 %v2545_v56, %v2198_v55  ;;  %v542_v58 = vpop.f32.mrb[1].mxu0  ;;  %v2799_v56 = vld [vmem:[#allocation8 + $0x160] sm:$0xff]  }
 0x1b2   : > { %v543_v59 = vadd.f32 %v2198_v55, %v542_v58  ;;  %v2546_v60 = vpop.f32.mrb[2].mxu0  ;;  %v2801_v58 = vld [vmem:[#allocation8 + $0x120] sm:$0xff]  }
 0x1b3   : > { %v3476_v61 = vmax.f32 %v551_v57, 0.0  ;;  %v554_v62 = vadd.f32 %v2546_v60, %v2198_v55  ;;  %v545_v63 = vpop.f32.mrb[3].mxu0  ;;  %v2800_v57 = vld [vmem:[#allocation8 + $0x198] sm:$0xff]  }
 0x1b4   : > { %v3478_v1 = vmax.f32 %v543_v59, 0.0  ;;  %v546_v2 = vadd.f32 %v2198_v55, %v545_v63  ;;  %v2803_v63 = vld [vmem:[#allocation8 + $0x168] sm:$0xff]  }
 0x1b5   : > { %605 = vst [vmem:[#allocation2 + $0x31] sm:$0xff] %v3476_v61  ;;  %v3481_v3 = vmax.f32 %v554_v62, 0.0  ;;  %v2802_v62 = vld [vmem:[#allocation8 + $0x1e0] sm:$0xff]  }
 0x1b6   : > { %603 = vst [vmem:[#allocation2 + $0x11] sm:$0xff] %v3478_v1  ;;  %v3484_v4 = vmax.f32 %v546_v2, 0.0  ;;  %v685_v5 = vpack.c.bf16 %v3478_v1, %v619_v0 }
 0x1b7   : > { %606 = vst [vmem:[#allocation2 + $0x41] sm:$0xff] %v3481_v3  ;;  %v697_v6 = vpack.c.bf16 %v3481_v3, %v3476_v61 }
 0x1b8   : > { %604 = vst [vmem:[#allocation2 + $0x21] sm:$0xff] %v3484_v4  ;;  %v2549_v7 = vpop.f32.mrb[4].mxu0  ;;  %1335 = vmatprep.mubr.bf16.mxu1 %v685_v5  ;;  %v3493_v8 = vpack.c.bf16 %v3476_v61, %v3484_v4  ;;  %v688_v9 = vpack.c.bf16 %v3484_v4, %v3478_v1  ;;  %v2820_v1 = vld [vmem:[#allocation8 + $0x220] sm:$0xff]  }
 0x1b9   : > { %v567_v10 = vadd.f32 %v2549_v7, %v2198_v55  ;;  %v558_v11 = vpop.f32.mrb[5].mxu0  ;;  %v2804_v7 = vld [vmem:[#allocation8 + $0x1a0] sm:$0xff]  }
 0x1ba   : > { %v559_v12 = vadd.f32 %v2198_v55, %v558_v11  ;;  %v2550_v13 = vpop.f32.mrb[6].mxu0  ;;  %v2805_v11 = vld [vmem:[#allocation8 + $0x128] sm:$0xff]  }
 0x1bb   : > { %v3497_v14 = vmax.f32 %v567_v10, 0.0  ;;  %v570_v15 = vadd.f32 %v2550_v13, %v2198_v55  ;;  %v561_v16 = vpop.f32.mrb[7].mxu0 }
 0x1bc   : > { %v3499_v17 = vmax.f32 %v559_v12, 0.0  ;;  %v562_v18 = vadd.f32 %v2198_v55, %v561_v16  ;;  %v637_v35 = vld [vmem:[#allocation2 + $0x30] sm:$0xff]  ;;  %v2798_v55 = vld [vmem:[#allocation8 + $0x1d8] sm:$0xff]   ;;  %v2806_v12 = vld [vmem:[#allocation8 + $0x1e8] sm:$0xff]  }
 0x1bd   : > { %609 = vst [vmem:[#allocation2 + $0x71] sm:$0xff] %v3497_v14  ;;  %v3502_v19 = vmax.f32 %v570_v15, 0.0  ;;  %v612_v20 = vld [vmem:[#allocation2 + $0x10] sm:$0xff]  ;;  %v2808_v16 = vld [vmem:[#allocation8 + $0x1a8] sm:$0xff]  }
 0x1be   : > { %607 = vst [vmem:[#allocation2 + $0x51] sm:$0xff] %v3499_v17  ;;  %v3505_v22 = vmax.f32 %v562_v18, 0.0  ;;  %v684_v23 = vpack.c.bf16 %v612_v20, %v3120_v37  ;;  %v3508_v25 = vld [vmem:[#allocation2 + $0x12] sm:$0xff]  ;;  %v3512_v27 = vpack.c.bf16 %v3499_v17, %v3481_v3  ;;  %v638_v29 = vld [vmem:[#allocation2 + $0x40] sm:$0xff] }
 0x1bf   : > { %610 = vst [vmem:[#allocation2 + $0x81] sm:$0xff] %v3502_v19  ;;  %v636_v28 = vld [vmem:[#allocation2 + $0x20] sm:$0xff]  ;;  %v715_v30 = vpack.c.bf16 %v3502_v19, %v3497_v14  ;;  %v686_v34 = vpack.c.bf16 %v3508_v25, %v627_v24  ;;  %v696_v40 = vpack.c.bf16 %v638_v29, %v637_v35  ;;  %v3531_v50 = vld [vmem:[#allocation2 + $0x32] sm:$0xff] }
 0x1c0   : > { %608 = vst [vmem:[#allocation2 + $0x61] sm:$0xff] %v3505_v22  ;;  %1336 = vmatmul.mubr.bf16.vlgmr.msra.gmra.mrb[0].mxu1 %v684_v23  ;;  %v687_v31 = vpack.c.bf16 %v636_v28, %v612_v20  ;;  %v3520_v33 = vpack.c.bf16 %v3497_v14, %v3505_v22  ;;  %v706_v39 = vpack.c.bf16 %v3505_v22, %v3499_v17  ;;  %v3528_v45 = vld [vmem:[#allocation2 + $0x22] sm:$0xff]  ;;  %v2807_v15 = vld [vmem:[#allocation8 + $0x170] sm:$0xff]  }
 0x1c1   : > { %2406 = vmatpush3.bf16.msra.mxu1 %v2785_v21  ;;  %1343 = vmatprep.mubr.bf16.mxu1 %v3493_v8  ;;  %v3526_v44 = vpack.c.bf16 %v637_v35, %v636_v28  ;;  %v3536_v53 = vpack.c.bf16 %v3531_v50, %v3528_v45  ;;  %v631_v5 = vld [vmem:[#allocation2 + $0x42] sm:$0xff]  ;;  %v2809_v18 = vld [vmem:[#allocation8 + $0x130] sm:$0xff]   ;;  %v689_v28 = vpack.c.bf16 %v3528_v45, %v3508_v25 }
 0x1c2   : > { %1400 = vmatprep.mubr.bf16.mxu0 %v687_v31  ;;  %2407 = vmatprep.subr.bf16.mxu1 %v2787_v26  ;;  %v2810_v20 = vld [vmem:[#allocation8 + $0x1f0] sm:$0xff]   ;;  %v2811_v26 = vld [vmem:[#allocation8 + $0x178] sm:$0xff]   ;;  %v2816_v35 = vld [vmem:[#allocation8 + $0x200] sm:$0xff]  }
 0x1c3   : > { %1401 = vmatmul.mubr.bf16.vlgmr.msra.gmra.mrb[8].mxu0 %v686_v34  ;;  %v2814_v34 = vld [vmem:[#allocation8 + $0x1f8] sm:$0xff]   ;;  %v2817_v25 = vld [vmem:[#allocation8 + $0x208] sm:$0xff]   ;;  %v2822_v3 = vld [vmem:[#allocation8 + $0x230] sm:$0xff]  }
 0x1c4   : > { %1408 = vmatprep.mubr.bf16.mxu0 %v696_v40  ;;  %2446 = vmatpush3.bf16.msra.mxu0 %v2788_v32  ;;  %v641_v0 = vld [vmem:[#allocation2 + $0x70] sm:$0xff]  ;;  %v2813_v32 = vld [vmem:[#allocation8 + $0x138] sm:$0xff]   ;;  %v2825_v14 = vld [vmem:[#allocation9 + $0x8] sm:$0xff]  }
 0x1c5   : > { %2408 = vmatpush3.bf16.msra.mxu1 %v2789_v36  ;;  %2447 = vmatprep.subr.bf16.mxu0 %v2790_v38  ;;  %v639_v48 = vld [vmem:[#allocation2 + $0x50] sm:$0xff]  ;;  %v2815_v36 = vld [vmem:[#allocation8 + $0x1b8] sm:$0xff]   ;;  %v698_v38 = vpack.c.bf16 %v631_v5, %v3531_v50 }
 0x1c6   : > { %2409 = vmatprep.subr.bf16.mxu1 %v2791_v41  ;;  %v3539_v59 = vpack.c.bf16 %v639_v48, %v638_v29  ;;  %v3541_v60 = vld [vmem:[#allocation2 + $0x52] sm:$0xff]  ;;  %v3543_v2 = vld [vmem:[#allocation2 + $0x80] sm:$0xff] }
 0x1c7   : > { %v640_v49 = vld [vmem:[#allocation2 + $0x60] sm:$0xff]  ;;  %v3548_v10 = vpack.c.bf16 %v3541_v60, %v631_v5  ;;  %v714_v13 = vpack.c.bf16 %v3543_v2, %v641_v0  ;;  %v634_v24 = vld [vmem:[#allocation2 + $0x72] sm:$0xff]  ;;  %v717_v17 = vpack.c.bf16 %v3120_v37, %v3543_v2 }
 0x1c8   : > { %2448 = vmatpush3.bf16.msra.mxu0 %v2792_v42  ;;  %1344 = vmatmul.mubr.bf16.gmra.mrb[4].mxu1 %v3526_v44  ;;  %v705_v52 = vpack.c.bf16 %v640_v49, %v639_v48  ;;  %v711_v21 = vpack.c.bf16 %v641_v0, %v640_v49  ;;  %v633_v23 = vld [vmem:[#allocation2 + $0x62] sm:$0xff]  ;;  %v2812_v29 = vld [vmem:[#allocation8 + $0x1b0] sm:$0xff]   ;;  %v2207_v48 = vld [vmem:[%s3677_s4] ss:$0 sm:$0xff] }
 0x1c9   : > { %2410 = vmatpush3.bf16.msra.mxu1 %v2793_v43  ;;  %1351 = vmatprep.mubr.bf16.mxu1 %v3512_v27  ;;  %v713_v31 = vpack.c.bf16 %v634_v24, %v633_v23  ;;  %v2818_v40 = vld [vmem:[#allocation8 + $0x210] sm:$0xff]   ;;  %v707_v41 = vpack.c.bf16 %v633_v23, %v3541_v60  ;;  %v658_v4 = vld [vmem:[#allocation2 + $0x82] sm:$0xff] }
 0x1ca   : > { %2449 = vmatprep.subr.bf16.mxu0 %v2794_v46  ;;  %2411 = vmatprep.subr.bf16.mxu1 %v2795_v47  ;;  %v675_v42 = vld [vmem:[#allocation2 + $0x91] sm:$0xff]  ;;  %v2828_v43 = vld [vmem:[#allocation9 + $0x20] sm:$0xff]  }
 0x1cb   : > { %1409 = vmatmul.mubr.bf16.gmra.mrb[12].mxu0 %v3536_v53  ;;  %v718_v61 = vpack.c.bf16 %v675_v42, %v3502_v19  ;;  %v683_v22 = vld [vmem:[#allocation2 + $0x92] sm:$0xff] }
 0x1cc   : > { %2450 = vmatpush3.bf16.msra.mxu0 %v2796_v51  ;;  %1416 = vmatprep.mubr.bf16.mxu0 %v705_v52  ;;  %v2826_v19 = vld [vmem:[#allocation9 + $0x10] sm:$0xff]   ;;  %v2831_v46 = vld [vmem:[#allocation9 + $0x38] sm:$0xff]  }
 0x1cd   : > { %2412 = vmatpush3.bf16.msra.mxu1 %v2797_v54  ;;  %2451 = vmatprep.subr.bf16.mxu0 %v2798_v55  ;;  %v2830_v45 = vld [vmem:[#allocation9 + $0x30] sm:$0xff]  }
 0x1ce   : > { %2413 = vmatprep.subr.bf16.mxu1 %v2799_v56 }
 0x1d0   : > { %2452 = vmatpush3.bf16.msra.mxu0 %v2800_v57  ;;  %1352 = vmatmul.mubr.bf16.gmra.mrb[8].mxu1 %v3539_v59 }
 0x1d1   : > { %2414 = vmatpush3.bf16.msra.mxu1 %v2801_v58  ;;  %1359 = vmatprep.mubr.bf16.mxu1 %v3520_v33 }
 0x1d2   : > { %2453 = vmatprep.subr.bf16.mxu0 %v2802_v62  ;;  %2415 = vmatprep.subr.bf16.mxu1 %v2803_v63 }
 0x1d3   : > { %1417 = vmatmul.mubr.bf16.gmra.mrb[16].mxu0 %v3548_v10 }
 0x1d4   : > { %1424 = vmatprep.mubr.bf16.mxu0 %v714_v13  ;;  %2454 = vmatpush3.bf16.msra.mxu0 %v2804_v7 }
 0x1d5   : > { %2416 = vmatpush3.bf16.msra.mxu1 %v2805_v11  ;;  %2455 = vmatprep.subr.bf16.mxu0 %v2806_v12 }
 0x1d6   : > { %2417 = vmatprep.subr.bf16.mxu1 %v2807_v15 }
 0x1d8   : > { %2456 = vmatpush3.bf16.msra.mxu0 %v2808_v16  ;;  %1360 = vmatmul.mubr.bf16.gmra.mrb[12].mxu1 %v711_v21 }
 0x1d9   : > { %2418 = vmatpush3.bf16.msra.mxu1 %v2809_v18  ;;  %1465 = vmatprep.mubr.bf16.mxu1 %v689_v28 }
 0x1da   : > { %2457 = vmatprep.subr.bf16.mxu0 %v2810_v20  ;;  %2419 = vmatprep.subr.bf16.mxu1 %v2811_v26 }
 0x1db   : > { %1425 = vmatmul.mubr.bf16.gmra.mrb[20].mxu0 %v713_v31 }
 0x1dc   : > { %2458 = vmatpush3.bf16.msra.mxu0 %v2812_v29  ;;  %1530 = vmatprep.mubr.bf16.mxu0 %v3493_v8  ;;  %v2819_v8 = vld [vmem:[#allocation8 + $0x218] sm:$0xff]  }
 0x1dd   : > { %2420 = vmatpush3.bf16.msra.mxu1 %v2813_v32  ;;  %2459 = vmatprep.subr.bf16.mxu0 %v2814_v34 }
 0x1de   : > { %2551 = vmatprep.subr.bf16.mxu1 %v2816_v35 }
 0x1e0   : > { %2460 = vmatpush3.bf16.msra.mxu0 %v2815_v36  ;;  %1466 = vmatmul.mubr.bf16.vlgmr.msra.gmra.mrb[16].mxu1 %v688_v9  ;;  %v2821_v9 = vld [vmem:[#allocation8 + $0x228] sm:$0xff]  }
 0x1e1   : > { %2552 = vmatpush3.bf16.msra.mxu1 %v2816_v35  ;;  %1473 = vmatprep.mubr.bf16.mxu1 %v698_v38 }
 0x1e2   : > { %2553 = vmatprep.subr.bf16.mxu1 %v2817_v25 }
 0x1e3   : > { %1531 = vmatmul.mubr.bf16.vlgmr.msra.gmra.mrb[24].mxu0 %v3526_v44  ;;  %v2829_v44 = vld [vmem:[#allocation9 + $0x28] sm:$0xff]  }
 0x1e4   : > { %1538 = vmatprep.mubr.bf16.mxu0 %v3512_v27  ;;  %v716_v27 = vpack.c.bf16 %v658_v4, %v634_v24 }
 0x1e5   : > { %2554 = vmatpush3.bf16.msra.mxu1 %v2817_v25 }
 0x1e6   : > { %2555 = vmatprep.subr.bf16.mxu1 %v2818_v40 }
 0x1e8   : > { %1474 = vmatmul.mubr.bf16.gmra.mrb[20].mxu1 %v697_v6  ;;  %v2823_v6 = vld [vmem:[#allocation8 + $0x238] sm:$0xff]  }
 0x1e9   : > { %2556 = vmatpush3.bf16.msra.mxu1 %v2818_v40  ;;  %1481 = vmatprep.mubr.bf16.mxu1 %v707_v41 }
 0x1ea   : > { %2557 = vmatprep.subr.bf16.mxu1 %v2819_v8 }
 0x1eb   : > { %1539 = vmatmul.mubr.bf16.gmra.mrb[28].mxu0 %v3539_v59 }
 0x1ec   : > { %1546 = vmatprep.mubr.bf16.mxu0 %v3520_v33  ;;  %v719_v33 = vpack.c.bf16 %v683_v22, %v658_v4 }
 0x1ed   : > { %2558 = vmatpush3.bf16.msra.mxu1 %v2819_v8 }
 0x1ee   : > { %2559 = vmatprep.subr.bf16.mxu1 %v2820_v1 }
 0x1f0   : > { %1482 = vmatmul.mubr.bf16.gmra.mrb[24].mxu1 %v706_v39  ;;  %v2824_v39 = vld [vmem:[#allocation9] sm:$0xff]  }
 0x1f1   : > { %2560 = vmatpush3.bf16.msra.mxu1 %v2820_v1  ;;  %1489 = vmatprep.mubr.bf16.mxu1 %v716_v27 }
 0x1f2   : > { %2561 = vmatprep.subr.bf16.mxu1 %v2821_v9  ;;  %2575 = vmatprep.subr.bf16.mxu0 %v2824_v39 }
 0x1f3   : > { %1547 = vmatmul.mubr.bf16.gmra.mrb[32].mxu0 %v711_v21 }
 0x1f4   : > { %1554 = vmatprep.mubr.bf16.mxu0 %v718_v61  ;;  %2576 = vmatpush3.bf16.msra.mxu0 %v2824_v39 }
 0x1f5   : > { %2562 = vmatpush3.bf16.msra.mxu1 %v2821_v9  ;;  %2577 = vmatprep.subr.bf16.mxu0 %v2825_v14 }
 0x1f6   : > { %2563 = vmatprep.subr.bf16.mxu1 %v2822_v3 }
 0x1f8   : > { %1490 = vmatmul.mubr.bf16.gmra.mrb[28].mxu1 %v715_v30  ;;  %2578 = vmatpush3.bf16.msra.mxu0 %v2825_v14  ;;  %v2827_v30 = vld [vmem:[#allocation9 + $0x18] sm:$0xff]  }
 0x1f9   : > { %2564 = vmatpush3.bf16.msra.mxu1 %v2822_v3  ;;  %2567 = vmatprep.mubr.bf16.mxu1 %v3536_v53 }
 0x1fa   : > { %2565 = vmatprep.subr.bf16.mxu1 %v2823_v6  ;;  %2579 = vmatprep.subr.bf16.mxu0 %v2826_v19 }
 0x1fb   : > { %1555 = vmatmul.mubr.bf16.gmra.mrb[36].mxu0 %v717_v17 }
 0x1fc   : > { %2580 = vmatpush3.bf16.msra.mxu0 %v2826_v19 }
 0x1fd   : > { %2566 = vmatpush3.bf16.msra.mxu1 %v2823_v6  ;;  %2581 = vmatprep.subr.bf16.mxu0 %v2827_v30 }
 0x1fe   : > { %2599 = vmatprep.subr.bf16.mxu1 %v3120_v37 }
 0x200   : > { %2568 = vmatmul.mubr.bf16.vlgmr.msra.gmra.mrb[32].mxu1 %v3548_v10  ;;  %2582 = vmatpush3.bf16.msra.mxu0 %v2827_v30 }
 0x201   : > { %2571 = vmatprep.mubr.bf16.mxu1 %v713_v31  ;;  %2583 = vmatprep.subr.bf16.mxu0 %v2828_v43 }
 0x204   : > { %2584 = vmatpush3.bf16.msra.mxu0 %v2828_v43 }
 0x205   : > { %2585 = vmatprep.subr.bf16.mxu0 %v2829_v44 }
 0x208   : > { %2572 = vmatmul.mubr.bf16.gmra.mrb[36].mxu1 %v719_v33  ;;  %2586 = vmatpush3.bf16.msra.mxu0 %v2829_v44 }
 0x209   : > { %2587 = vmatprep.subr.bf16.mxu0 %v2830_v45  ;;  %2615 = vmatprep.mubr.msk.bf16.mxu1 %vm3121_vm0, %v3120_v37 }
 0x20c   : > { %2588 = vmatpush3.bf16.msra.mxu0 %v2830_v45 }
 0x20d   : > { %2589 = vmatprep.subr.bf16.mxu0 %v2831_v46 }
 0x210   : > { %2590 = vmatpush3.bf16.msra.mxu0 %v2831_v46 }
 0x211   : > { %2619 = vmatprep.subr.bf16.mxu0 %v3120_v37 }
 0x293   : > { %v2341_v47 = vpop.f32.mrb[0].mxu1 }
 0x294   : > { %v2342_v49 = vpop.f32.mrb[1].mxu1 }
 0x295   : > { %v2343_v50 = vadd.f32 %v2342_v49, %v2341_v47  ;;  %v2344_v51 = vpop.f32.mrb[2].mxu1 }
 0x296   : > { %v2381_v52 = vpop.f32.mrb[8].mxu0  ;;  %v2345_v53 = vpop.f32.mrb[3].mxu1 }
 0x297   : > { %v1338_v54 = vadd.f32 %v2343_v50, %v2207_v48  ;;  %v2346_v55 = vadd.f32 %v2345_v53, %v2344_v51  ;;  %v2382_v56 = vpop.f32.mrb[9].mxu0 }
 0x298   : > { %v2383_v57 = vadd.f32 %v2382_v56, %v2381_v52  ;;  %v2384_v58 = vpop.f32.mrb[10].mxu0 }
 0x299   : > { %v1341_v59 = vadd.f32 %v2346_v55, %v2207_v48  ;;  %v2385_v60 = vpop.f32.mrb[11].mxu0 }
 0x29a   : > { %v1403_v62 = vadd.f32 %v2383_v57, %v1338_v54  ;;  %v2386_v63 = vadd.f32 %v2385_v60, %v2384_v58 }
 0x29b   : > { %v2347_v0 = vpop.f32.mrb[4].mxu1 }
 0x29c   : > { %v1406_v2 = vadd.f32 %v2386_v63, %v1341_v59  ;;  %v2348_v5 = vpop.f32.mrb[5].mxu1 }
 0x29d   : > { %v2349_v7 = vadd.f32 %v2348_v5, %v2347_v0  ;;  %v2350_v10 = vpop.f32.mrb[6].mxu1 }
 0x29e   : > { %v2387_v11 = vpop.f32.mrb[12].mxu0  ;;  %v2351_v12 = vpop.f32.mrb[7].mxu1 }
 0x29f   : > { %v1346_v13 = vadd.f32 %v2349_v7, %v2207_v48  ;;  %v2352_v15 = vadd.f32 %v2351_v12, %v2350_v10  ;;  %v2388_v16 = vpop.f32.mrb[13].mxu0 }
 0x2a0   : > { %v2389_v18 = vadd.f32 %v2388_v16, %v2387_v11  ;;  %v2390_v20 = vpop.f32.mrb[14].mxu0 }
 0x2a1   : > { %v1349_v21 = vadd.f32 %v2352_v15, %v2207_v48  ;;  %v2391_v23 = vpop.f32.mrb[15].mxu0 }
 0x2a2   : > { %v1411_v24 = vadd.f32 %v2389_v18, %v1346_v13  ;;  %v2392_v26 = vadd.f32 %v2391_v23, %v2390_v20 }
 0x2a3   : > { %v2353_v28 = vpop.f32.mrb[8].mxu1 }
 0x2a4   : > { %v1414_v29 = vadd.f32 %v2392_v26, %v1349_v21  ;;  %v2354_v31 = vpop.f32.mrb[9].mxu1 }
 0x2a5   : > { %v2355_v32 = vadd.f32 %v2354_v31, %v2353_v28  ;;  %v2356_v34 = vpop.f32.mrb[10].mxu1 }
 0x2a6   : > { %v2393_v35 = vpop.f32.mrb[16].mxu0  ;;  %v2357_v36 = vpop.f32.mrb[11].mxu1 }
 0x2a7   : > { %v1354_v25 = vadd.f32 %v2355_v32, %v2207_v48  ;;  %v2358_v38 = vadd.f32 %v2357_v36, %v2356_v34  ;;  %v2394_v40 = vpop.f32.mrb[17].mxu0 }
 0x2a8   : > { %v2395_v8 = vadd.f32 %v2394_v40, %v2393_v35  ;;  %v2396_v41 = vpop.f32.mrb[18].mxu0 }
 0x2a9   : > { %v1357_v1 = vadd.f32 %v2358_v38, %v2207_v48  ;;  %v2397_v4 = vpop.f32.mrb[19].mxu0 }
 0x2aa   : > { %v1419_v9 = vadd.f32 %v2395_v8, %v1354_v25  ;;  %v2398_v27 = vadd.f32 %v2397_v4, %v2396_v41 }
 0x2ab   : > { %v2359_v42 = vpop.f32.mrb[12].mxu1 }
 0x2ac   : > { %v1422_v61 = vadd.f32 %v2398_v27, %v1357_v1  ;;  %v2360_v3 = vpop.f32.mrb[13].mxu1 }
 0x2ad   : > { %v2361_v6 = vadd.f32 %v2360_v3, %v2359_v42  ;;  %v2362_v17 = vpop.f32.mrb[14].mxu1 }
 0x2ae   : > { %v2399_v22 = vpop.f32.mrb[20].mxu0  ;;  %v2363_v33 = vpop.f32.mrb[15].mxu1 }
 0x2af   : > { %v1362_v39 = vadd.f32 %v2361_v6, %v2207_v48  ;;  %v2364_v14 = vadd.f32 %v2363_v33, %v2362_v17  ;;  %v2400_v19 = vpop.f32.mrb[21].mxu0 }
 0x2b0   : > { %v2401_v30 = vadd.f32 %v2400_v19, %v2399_v22  ;;  %v2402_v43 = vpop.f32.mrb[22].mxu0 }
 0x2b1   : > { %v1365_v44 = vadd.f32 %v2364_v14, %v2207_v48  ;;  %v2403_v45 = vpop.f32.mrb[23].mxu0 }
 0x2b2   : > { %v1427_v46 = vadd.f32 %v2401_v30, %v1362_v39  ;;  %v2404_v47 = vadd.f32 %v2403_v45, %v2402_v43 }
 0x2b3   : > { %v2421_v49 = vpop.f32.mrb[16].mxu1 }
 0x2b4   : > { %v1430_v50 = vadd.f32 %v2404_v47, %v1365_v44  ;;  %v2422_v51 = vpop.f32.mrb[17].mxu1 }
 0x2b5   : > { %v2423_v52 = vadd.f32 %v2422_v51, %v2421_v49  ;;  %v2424_v53 = vpop.f32.mrb[18].mxu1 }
 0x2b6   : > { %v2461_v54 = vpop.f32.mrb[24].mxu0  ;;  %v2425_v55 = vpop.f32.mrb[19].mxu1 }
 0x2b7   : > { %v1468_v56 = vadd.f32 %v2423_v52, %v1403_v62  ;;  %v2426_v57 = vadd.f32 %v2425_v55, %v2424_v53  ;;  %v2462_v58 = vpop.f32.mrb[25].mxu0 }
 0x2b8   : > { %v2463_v59 = vadd.f32 %v2462_v58, %v2461_v54  ;;  %v2464_v60 = vpop.f32.mrb[26].mxu0 }
 0x2b9   : > { %v1471_v63 = vadd.f32 %v2426_v57, %v1406_v2  ;;  %v2465_v0 = vpop.f32.mrb[27].mxu0 }
 0x2ba   : > { %v2466_v5 = vadd.f32 %v2465_v0, %v2464_v60  ;;  %v1533_v7 = vadd.f32 %v2463_v59, %v1468_v56 }
 0x2bb   : > { %v2427_v48 = vpop.f32.mrb[20].mxu1 }
 0x2bc   : > { %v2428_v10 = vpop.f32.mrb[21].mxu1  ;;  %v1536_v11 = vadd.f32 %v2466_v5, %v1471_v63 }
 0x2bd   : > { %v2429_v12 = vadd.f32 %v2428_v10, %v2427_v48  ;;  %v2430_v13 = vpop.f32.mrb[22].mxu1 }
 0x2be   : > { %v2467_v15 = vpop.f32.mrb[28].mxu0  ;;  %v2431_v16 = vpop.f32.mrb[23].mxu1 }
 0x2bf   : > { %v1476_v18 = vadd.f32 %v2429_v12, %v1411_v24  ;;  %v2432_v20 = vadd.f32 %v2431_v16, %v2430_v13  ;;  %v2468_v21 = vpop.f32.mrb[29].mxu0 }
 0x2c0   : > { %v2469_v23 = vadd.f32 %v2468_v21, %v2467_v15  ;;  %v2470_v62 = vpop.f32.mrb[30].mxu0 }
 0x2c1   : > { %v1479_v26 = vadd.f32 %v2432_v20, %v1414_v29  ;;  %v2471_v28 = vpop.f32.mrb[31].mxu0 }
 0x2c2   : > { %v2472_v31 = vadd.f32 %v2471_v28, %v2470_v62  ;;  %v1541_v32 = vadd.f32 %v2469_v23, %v1476_v18 }
 0x2c3   : > { %v2433_v2 = vpop.f32.mrb[24].mxu1 }
 0x2c4   : > { %v2434_v34 = vpop.f32.mrb[25].mxu1  ;;  %v1544_v35 = vadd.f32 %v2472_v31, %v1479_v26  ;;  %v2832_v31 = vld [vmem:[#allocation11] sm:$0xff]  }
 0x2c5   : > { %v2435_v36 = vadd.f32 %v2434_v34, %v2433_v2  ;;  %v2436_v25 = vpop.f32.mrb[26].mxu1  ;;  %2600 = vmatpush3.bf16.msra.mxu1 %v2832_v31  ;;  %v2834_v2 = vld [vmem:[#allocation11 + $0x10] sm:$0xff]   ;;  %v2835_v34 = vld [vmem:[#allocation11 + $0x18] sm:$0xff]  }
 0x2c6   : > { %v2473_v38 = vpop.f32.mrb[32].mxu0  ;;  %v2437_v40 = vpop.f32.mrb[27].mxu1  ;;  %2601 = vmatprep.subr.bf16.mxu1 %v3120_v37 }
 0x2c7   : > { %v1484_v8 = vadd.f32 %v2435_v36, %v1419_v9  ;;  %v2438_v41 = vadd.f32 %v2437_v40, %v2436_v25  ;;  %v2474_v1 = vpop.f32.mrb[33].mxu0  ;;  %v2837_v36 = vld [vmem:[#allocation11 + $0x28] sm:$0xff]   ;;  %v2838_v25 = vld [vmem:[#allocation11 + $0x30] sm:$0xff]   ;;  %v2840_v40 = vld [vmem:[#allocation12] sm:$0xff]  }
 0x2c8   : > { %v2475_v4 = vadd.f32 %v2474_v1, %v2473_v38  ;;  %v2476_v24 = vpop.f32.mrb[34].mxu0  ;;  %v2839_v38 = vld [vmem:[#allocation11 + $0x38] sm:$0xff]  }
 0x2c9   : > { %v1487_v27 = vadd.f32 %v2438_v41, %v1422_v61  ;;  %v2477_v42 = vpop.f32.mrb[35].mxu0  ;;  %v2842_v41 = vld [vmem:[#allocation12 + $0x10] sm:$0xff]   ;;  %v2843_v1 = vld [vmem:[#allocation12 + $0x18] sm:$0xff]  }
 0x2ca   : > { %v2478_v3 = vadd.f32 %v2477_v42, %v2476_v24  ;;  %v1549_v6 = vadd.f32 %v2475_v4, %v1484_v8  ;;  %v2841_v8 = vld [vmem:[#allocation12 + $0x8] sm:$0xff]   ;;  %v2844_v4 = vld [vmem:[#allocation12 + $0x20] sm:$0xff]  }
 0x2cb   : > { %v2439_v29 = vpop.f32.mrb[28].mxu1  ;;  %v2845_v24 = vld [vmem:[#allocation12 + $0x28] sm:$0xff]  }
 0x2cc   : > { %v2440_v17 = vpop.f32.mrb[29].mxu1  ;;  %v1552_v22 = vadd.f32 %v2478_v3, %v1487_v27  ;;  %v2846_v27 = vld [vmem:[#allocation12 + $0x30] sm:$0xff]   ;;  %v2280_v3 = vld [vmem:[%s3679_s6] ss:$0 sm:$0xff] }
 0x2cd   : > { %v2441_v33 = vadd.f32 %v2440_v17, %v2439_v29  ;;  %v2442_v39 = vpop.f32.mrb[30].mxu1 }
 0x2ce   : > { %v2479_v14 = vpop.f32.mrb[36].mxu0  ;;  %v2443_v19 = vpop.f32.mrb[31].mxu1 }
 0x2cf   : > { %v1492_v30 = vadd.f32 %v2441_v33, %v1427_v46  ;;  %v2444_v43 = vadd.f32 %v2443_v19, %v2442_v39  ;;  %v2480_v44 = vpop.f32.mrb[37].mxu0 }
 0x2d0   : > { %v2481_v45 = vadd.f32 %v2480_v44, %v2479_v14  ;;  %v2482_v9 = vpop.f32.mrb[38].mxu0 }
 0x2d1   : > { %v1495_v47 = vadd.f32 %v2444_v43, %v1430_v50  ;;  %v2483_v49 = vpop.f32.mrb[39].mxu0 }
 0x2d2   : > { %v2484_v51 = vadd.f32 %v2483_v49, %v2482_v9  ;;  %v1557_v52 = vadd.f32 %v2481_v45, %v1492_v30 }
 0x2d3   : > { %v2569_v61 = vpop.f32.mrb[32].mxu1 }
 0x2d4   : > { %v1606_v53 = vadd.f32 %v2569_v61, %v1541_v32  ;;  %v1597_v54 = vpop.f32.mrb[33].mxu1  ;;  %v1560_v55 = vadd.f32 %v2484_v51, %v1495_v47  ;;  %v2833_v32 = vld [vmem:[#allocation11 + $0x8] sm:$0xff]  }
 0x2d5   : > { %v1598_v56 = vadd.f32 %v1597_v54, %v1533_v7  ;;  %v2570_v57 = vpop.f32.mrb[34].mxu1  ;;  %2602 = vmatpush3.bf16.msra.mxu1 %v2833_v32 }
 0x2d6   : > { %v1609_v58 = vadd.f32 %v2570_v57, %v1544_v35  ;;  %v1600_v59 = vpop.f32.mrb[35].mxu1  ;;  %v1630_v63 = vmax.f32 %v1606_v53, 0.0  ;;  %2603 = vmatprep.subr.bf16.mxu1 %v3120_v37  ;;  %v2836_v35 = vld [vmem:[#allocation11 + $0x20] sm:$0xff]  }
 0x2d7   : > { %v1601_v60 = vadd.f32 %v1600_v59, %v1536_v11  ;;  %v1628_v46 = vmax.f32 %v1598_v56, 0.0 }
 0x2d8   : > { %v1631_v0 = vmax.f32 %v1609_v58, 0.0 }
 0x2d9   : > { %v1629_v5 = vmax.f32 %v1601_v60, 0.0  ;;  %2604 = vmatpush3.bf16.msra.mxu1 %v2834_v2 }
 0x2da   : > { %v1637_v48 = vpack.c.bf16 %v1631_v0, %v1630_v63  ;;  %2605 = vmatprep.subr.bf16.mxu1 %v3120_v37 }
 0x2db   : > { %v1636_v10 = vpack.c.bf16 %v1629_v5, %v1628_v46  ;;  %v2573_v12 = vpop.f32.mrb[36].mxu1  ;;  %v2847_v5 = vld [vmem:[#allocation12 + $0x38] sm:$0xff]  }
 0x2dc   : > { %v1622_v50 = vadd.f32 %v2573_v12, %v1557_v52  ;;  %v1613_v13 = vpop.f32.mrb[37].mxu1 }
 0x2dd   : > { %v1614_v15 = vadd.f32 %v1613_v13, %v1549_v6  ;;  %v2574_v16 = vpop.f32.mrb[38].mxu1  ;;  %2591 = vmatprep.mubr.bf16.mxu0 %v1636_v10  ;;  %2606 = vmatpush3.bf16.msra.mxu1 %v2835_v34 }
 0x2de   : > { %v1625_v18 = vadd.f32 %v2574_v16, %v1560_v55  ;;  %v1616_v20 = vpop.f32.mrb[39].mxu1  ;;  %2592 = vmatmul.mubr.bf16.vlgmr.msra.gmra.mrb[40].mxu0 %v1637_v48  ;;  %v1634_v21 = vmax.f32 %v1622_v50, 0.0  ;;  %2607 = vmatprep.subr.bf16.mxu1 %v3120_v37 }
 0x2df   : > { %v1617_v7 = vadd.f32 %v1616_v20, %v1552_v22  ;;  %v1632_v62 = vmax.f32 %v1614_v15, 0.0  ;;  %2620 = vmatpush3.bf16.msra.mxu0 %v2840_v40 }
 0x2e0   : > { %v1635_v23 = vmax.f32 %v1625_v18, 0.0  ;;  %2621 = vmatprep.subr.bf16.mxu0 %v3120_v37 }
 0x2e1   : > { %v1633_v11 = vmax.f32 %v1617_v7, 0.0  ;;  %2608 = vmatpush3.bf16.msra.mxu1 %v2836_v35 }
 0x2e2   : > { %v1639_v26 = vpack.c.bf16 %v1635_v23, %v1634_v21  ;;  %2609 = vmatprep.subr.bf16.mxu1 %v3120_v37 }
 0x2e3   : > { %v1638_v28 = vpack.c.bf16 %v1633_v11, %v1632_v62  ;;  %2622 = vmatpush3.bf16.msra.mxu0 %v2841_v8  ;;  %v2008_v11 = vlaneseq }
 0x2e4   : > { %2623 = vmatprep.subr.bf16.mxu0 %v3120_v37 }
 0x2e5   : > { %2595 = vmatprep.mubr.bf16.mxu0 %v1638_v28  ;;  %2610 = vmatpush3.bf16.msra.mxu1 %v2837_v36 }
 0x2e6   : > { %2596 = vmatmul.mubr.bf16.gmra.mrb[44].mxu0 %v1639_v26  ;;  %2611 = vmatprep.subr.bf16.mxu1 %v3120_v37  ;;  %v2009_v26 = vshrl.u32 %v2008_v11, 7 }
 0x2e7   : > { %2635 = vmatprep.mubr.msk.bf16.mxu0 %vm3121_vm0, %v3120_v37  ;;  %2624 = vmatpush3.bf16.msra.mxu0 %v2842_v41  ;;  %v2852_v41 = vld [vmem:[%s3427_s14] sm:$0xff] }
 0x2e8   : > { %2625 = vmatprep.subr.bf16.mxu0 %v3120_v37  ;;  %v2010_v28 = vsub.s32 0, %v2009_v26 }
 0x2e9   : > { %2612 = vmatpush3.bf16.msra.mxu1 %v2838_v25 }
 0x2ea   : > { %2613 = vmatprep.subr.bf16.mxu1 %v3120_v37 }
 0x2eb   : > { %2626 = vmatpush3.bf16.msra.mxu0 %v2843_v1 }
 0x2ec   : > { %2627 = vmatprep.subr.bf16.mxu0 %v3120_v37 }
 0x2ed   : > { %2614 = vmatpush3.bf16.msra.mxu1 %v2839_v38 }
 0x2ef   : > { %2628 = vmatpush3.bf16.msra.mxu0 %v2844_v4  ;;  %v2853_v4 = vld [vmem:[%s3427_s14 + $0x8] sm:$0xff] }
 0x2f0   : > { %2629 = vmatprep.subr.bf16.mxu0 %v3120_v37 }
 0x2f3   : > { %2630 = vmatpush3.bf16.msra.mxu0 %v2845_v24 }
 0x2f4   : > { %2631 = vmatprep.subr.bf16.mxu0 %v3120_v37 }
 0x2f7   : > { %2632 = vmatpush3.bf16.msra.mxu0 %v2846_v27  ;;  %v2854_v27 = vld [vmem:[%s3427_s14 + $0x10] sm:$0xff] }
 0x2f8   : > { %2633 = vmatprep.subr.bf16.mxu0 %v3120_v37 }
 0x2fb   : > { %2634 = vmatpush3.bf16.msra.mxu0 %v2847_v5 }
 0x3b1   : > { %v2593_v42 = vpop.f32.mrb[40].mxu0 }
 0x3b2   : > { %v1745_v6 = vpop.f32.mrb[41].mxu0  ;;  %v1754_v39 = vadd.f32 %v2593_v42, %v2280_v3 }
 0x3b3   : > { %v2594_v29 = vpop.f32.mrb[42].mxu0  ;;  %v1746_v22 = vadd.f32 %v2280_v3, %v1745_v6 }
 0x3b4   : > { %v1748_v17 = vpop.f32.mrb[43].mxu0  ;;  %v1757_v19 = vadd.f32 %v2594_v29, %v2280_v3  ;;  %v2856_v29 = vld [vmem:[%s3427_s14 + $0x20] sm:$0xff] }
 0x3b5   : > { %v1749_v33 = vadd.f32 %v2280_v3, %v1748_v17 }
 0x3b7   : > { %v1776_v14 = vadd.f32 %v1749_v33, %v1746_v22 }
 0x3b9   : > { %v1777_v30 = vadd.f32 %v1776_v14, %v1754_v39  ;;  %v2597_v43 = vpop.f32.mrb[44].mxu0 }
 0x3ba   : > { %v1761_v44 = vpop.f32.mrb[45].mxu0  ;;  %v1770_v52 = vadd.f32 %v2597_v43, %v2280_v3 }
 0x3bb   : > { %v1762_v45 = vadd.f32 %v2280_v3, %v1761_v44  ;;  %v1778_v9 = vadd.f32 %v1777_v30, %v1757_v19  ;;  %v2598_v47 = vpop.f32.mrb[46].mxu0 }
 0x3bc   : > { %v1764_v37 = vpop.f32.mrb[47].mxu0  ;;  %v1773_v53 = vadd.f32 %v2598_v47, %v2280_v3 }
 0x3bd   : > { %v1779_v49 = vadd.f32 %v1778_v9, %v1762_v45  ;;  %v1765_v51 = vadd.f32 %v2280_v3, %v1764_v37  ;;  %v2855_v3 = vld [vmem:[%s3427_s14 + $0x18] sm:$0xff] }
 0x3bf   : > { %v1780_v61 = vadd.f32 %v1779_v49, %v1765_v51 }
 0x3c1   : > { %v1781_v54 = vadd.f32 %v1780_v61, %v1770_v52 }
 0x3c3   : > { %v1782_v55 = vadd.f32 %v1781_v54, %v1773_v53 }
 0x3c5   : > { %v1783_v56 = vrot.slane %v1782_v55, 4 }
 0x3c7   : > { %v1784_v57 = vadd.f32 %v1783_v56, %v1782_v55 }
 0x3c9   : > { %v1785_v58 = vrot.slane %v1784_v57, 2 }
 0x3cb   : > { %v1786_v59 = vadd.f32 %v1785_v58, %v1784_v57 }
 0x3cd   : > { %v1787_v60 = vrot.slane %v1786_v59, 1 }
 0x3cf   : > { %v1788_v63 = vadd.f32 %v1787_v60, %v1786_v59 }
 0x3d1   : > { %v1790_v0 = vmul.f32 0.015625, %v1788_v63 }
 0x3d3   : > { %v1791_v46 = vpack.c.bf16 %v1790_v0, %v1790_v0 }
 0x3d5   : > { %2616 = vmatmul.mubr.bf16.vlgmr.msra.gmra.mrb[40].mxu1 %v1791_v46 }
 0x4a8   : > { %v1890_v48 = vpop.f32.mrb[40].mxu1 }
 0x4a9   : > { %v1896_v10 = vmax.f32 %v1890_v48, 0.0  ;;  %v2617_v12 = vpop.f32.mrb[41].mxu1 }
 0x4aa   : > { %v1893_v50 = vpop.f32.mrb[42].mxu1 }
 0x4ab   : > { %v1897_v13 = vpack.c.bf16 %v1896_v10, %v1896_v10  ;;  %v2618_v15 = vpop.f32.mrb[43].mxu1 }
 0x4ad   : > { %2636 = vmatmul.mubr.bf16.vlgmr.msra.gmra.mrb[48].mxu0 %v1897_v13 }
 0x580   : > { %v1996_v16 = vpop.f32.mrb[48].mxu0 }
 0x581   : > { %v2305_v18 = vmul.f32 -1.442695, %v1996_v16  ;;  %v2637_v20 = vpop.f32.mrb[49].mxu0 }
 0x582   : > { %v1999_v7 = vpop.f32.mrb[50].mxu0 }
 0x583   : > { %2848 = vpow2.f32 %v2305_v18  ;;  %v2638_v21 = vpop.f32.mrb[51].mxu0 }
 0x58d   : > { %v2849_v23 = vpop.eup %2848 }
 0x58e   : > { %v2005_v62 = vadd.f32 1.0, %v2849_v23 }
 0x590   : > { %2850 = vrcp.f32 %v2005_v62 }
 0x59a   : > { %v2851_v31 = vpop.eup %2850 }
 0x59b   : > { %v2011_v32 = vrot.slane %v2851_v31, %v2010_v28 }
 0x59d   : > { %v2012_v2 = vmul.f32 %v2011_v32, %v1746_v22  ;;  %v2013_v34 = vmul.f32 %v2011_v32, %v1749_v33  ;;  %v2014_v35 = vmul.f32 %v2011_v32, %v1754_v39  ;;  %v2015_v36 = vmul.f32 %v2011_v32, %v1757_v19  ;;  %v2857_v22 = vld [vmem:[%s3427_s14 + $0x28] sm:$0xff]  ;;  %v2858_v39 = vld [vmem:[%s3427_s14 + $0x30] sm:$0xff]  ;;  %v2859_v19 = vld [vmem:[%s3427_s14 + $0x38] sm:$0xff]  ;;  %s2045_s14 = scalar_lea.sflag [#allocation5], %s3421_s29 }
 0x59e   : > { %v2016_v25 = vmul.f32 %v2011_v32, %v1762_v45  ;;  %v2017_v38 = vmul.f32 %v2011_v32, %v1765_v51  ;;  %v2018_v40 = vmul.f32 %v2011_v32, %v1770_v52  ;;  %v2019_v8 = vmul.f32 %v2011_v32, %v1773_v53 }
 0x59f   : > { %v2020_v1 = vadd.f32 %v2852_v41, %v2012_v2  ;;  %v2021_v24 = vadd.f32 %v2853_v4, %v2013_v34  ;;  %v2022_v42 = vadd.f32 %v2854_v27, %v2014_v35  ;;  %v2023_v6 = vadd.f32 %v2855_v3, %v2015_v36 }
 0x5a0   : > { %v2024_v17 = vadd.f32 %v2856_v29, %v2016_v25  ;;  %v2025_v33 = vadd.f32 %v2857_v22, %v2017_v38  ;;  %v2026_v14 = vadd.f32 %v2858_v39, %v2018_v40  ;;  %v2027_v30 = vadd.f32 %v2859_v19, %v2019_v8 }
 0x5a1   : > { %v2028_v43 = vmax.f32 %v2020_v1, 0.0  ;;  %v2029_v44 = vmax.f32 %v2021_v24, 0.0  ;;  %v2030_v45 = vmax.f32 %v2022_v42, 0.0  ;;  %v2031_v9 = vmax.f32 %v2023_v6, 0.0 }
 0x5a2   : > { %v2032_v47 = vmax.f32 %v2024_v17, 0.0  ;;  %v2033_v37 = vmax.f32 %v2025_v33, 0.0  ;;  %v2034_v49 = vmax.f32 %v2026_v14, 0.0  ;;  %v2035_v51 = vmax.f32 %v2027_v30, 0.0 }
 0x5a3   : > { %2036 = vst [vmem:[%s3605_s26] sm:$0xff] %v2028_v43  ;;  %2037 = vst [vmem:[%s3605_s26 + $0x8] sm:$0xff] %v2029_v44 }
 0x5a4   : > { %2038 = vst [vmem:[%s3605_s26 + $0x10] sm:$0xff] %v2030_v45  ;;  %2039 = vst [vmem:[%s3605_s26 + $0x18] sm:$0xff] %v2031_v9 }
 0x5a5   : > { %2040 = vst [vmem:[%s3605_s26 + $0x20] sm:$0xff] %v2032_v47  ;;  %2041 = vst [vmem:[%s3605_s26 + $0x28] sm:$0xff] %v2033_v37 }
 0x5a6   : > { %2042 = vst [vmem:[%s3605_s26 + $0x30] sm:$0xff] %v2034_v49  ;;  %2043 = vst [vmem:[%s3605_s26 + $0x38] sm:$0xff] %v2035_v51 }
 0x5a7   : > { %3043 = shalt.err (!%p3040_p8)
}
 0x5a8   : > { %s3044_s21 = scalar_lea.hbm %s3619_s20, 1024  ;;  %s3048_s26 = scalar_lea.hbm %s3705_s13, 2048 }
 0x5a9   : > { %p3045_p6 = scmp.ne.s32.totalorder %s3619_s20, %s3044_s21  ;;  %p3049_p3 = scmp.lt.u32.totalorder %s3619_s20, %s3705_s13 }
 0x5aa   : > { %p3050_p5 = scmp.lt.u32.totalorder %s3048_s26, %s3044_s21  ;;  %p3052_p7 = scmp.lt.u32.totalorder %s3044_s21, %s3619_s20 }
 0x5ab   : > { %p3046_p10 = pnand %p3045_p6, %p3706_p4 }
 0x5ac   : > { %p3051_p9 = por %p3050_p5, %p3049_p3 }
 0x5ad   : > { %p3047_p11 = pneg %p3046_p10 }
 0x5ae   : > { %p3053_p12 = por %p3052_p7, %p3051_p9 }
 0x5b0   : > { %p3054_p1 = pnand %p3053_p12, %p3047_p11 }
 0x5b2   : > { %3057 = shalt.err (!%p3054_p1)
}
 0x5b3   : > { %s3123_s16 = smov 128   ;;  %s3124_s24 = smov 8  }
 0x5b4   : > { %2661 = dma.vmem_to_hbm [thread:$0]  (%p3706_p4), %s3621_s1, 1024, %s3619_s20, %s2045_s14, %s3123_s16, %s3123_s16, %s3124_s24  }
 0x5b5 PF: > { %s2073_s18 = sand.u32 1, %s3096_s30   ;;  %p3707_p13 = scmp.ne.s32.totalorder %s3696_s25, 0 }
 0x5b6   : > { %p3708_p0 = scmp.ge.s32.totalorder %s3108_s12, 2  ;;  %s2074_s23 = scalar_lea.sflag [#allocation5], %s2073_s18 }
 0x5b8   : > { %p2684_p2 = pnand %p3708_p0, %p3707_p13 }
 0x5ba   : > { %3091 = dma.done.wait (!%p2684_p2), %s2074_s23, 1024  }
 0x5bb   : > { %3093 = vsyncadd (!%p2684_p2), %s2074_s23, 4294966272  ;;  %p25_p8 = scmp.ge.s32.totalorder %s3348_s27, 4   ;;  %s3709_s30 = smov %s3100_s10 }
 0x5bc   : > { %s3710_s10 = smov %s3104_s11  ;;  %s3711_s11 = smov %s3360_s22 }
 0x5bd   : > { %s3712_s12 = smov %s3348_s27  ;;  %27 = sbr.rel (!%p25_p8) target bundleno = 11 (0xb), region = 124 }
 0x5c4   :  { %2079 = vsyncpa [#allocation4], 1 }
 0x5c5   :  { %2081 = vsyncpa [#allocation4 + $0x1], 1 }
 0x5c6   :  { %2082 = vsyncpa [#allocation7], 1 }
 0x5c7   :  { %2083 = vsyncpa [#allocation10], 1 }
 0x5c8   :  { %2084 = vsyncpa [#allocation13], 1 }
 0x5c9   :  { %2085 = vsyncpa [#allocation5], 1 }
 0x5ca   :  { %2087 = vsyncpa [#allocation5 + $0x1], 1 }

</bundles_post_ra>
